<compile_context>
chip_gen: v7x
topology: tpu7x:2x2x1
jax: 0.10.0
libtpu: 0.0.40
codegen_flags: <defaults>
</compile_context>

<pallas_src>
import jax
import jax.numpy as jnp
from jax.experimental import pallas as pl
from jax.experimental.pallas import tpu as pltpu

HIDDEN = 768          # PhoBERT-base hidden_size
FC1_OUT = 256
NUM_CLASSES = 7
OUT_PAD = 128         # lane-dense padded logits width

_EMB_TILE_BUDGET = 6 * 1024 * 1024   # bytes per hidden-state tile (x2 for double-buffering)
_VMEM_LIMIT = 32 * 1024 * 1024       # explicit scoped-VMEM ceiling; safe on v5e/v6e/v7x


def _round_up(x, m):
    return (x + m - 1) // m * m


def _head_kernel(emb_ref, mask_ref, w1_ref, b1_ref, w2_ref, b2_ref,
                 out_ref, sum_acc, cnt_acc):
    s = pl.program_id(1)

    @pl.when(s == 0)
    def _init():
        sum_acc[...] = jnp.zeros_like(sum_acc)
        cnt_acc[...] = jnp.zeros_like(cnt_acc)

    # Masked-sum accumulation over this sequence tile (f32 accumulation).
    emb = emb_ref[...].astype(jnp.float32)        # (TB, TS, H)
    mask = mask_ref[...].astype(jnp.float32)      # (TB, TS)
    sum_acc[...] += jnp.sum(emb * mask[:, :, None], axis=1)        # (TB, H)
    cnt_acc[...] += jnp.sum(mask, axis=1, keepdims=True)           # (TB, 1)

    @pl.when(s == pl.num_programs(1) - 1)
    def _finalize():
        # Masked mean: EUP reciprocal + multiply instead of a (TB,H) VPU divide.
        inv_den = pl.reciprocal(jnp.maximum(cnt_acc[...], 1.0), approx=True)
        pooled = sum_acc[...] * inv_den                            # (TB, H)
        # drop1: identity (eval mode)
        h = jnp.dot(pooled, w1_ref[...],
                    preferred_element_type=jnp.float32) + b1_ref[...]      # (TB, 256)
        # drop2: identity (eval mode)
        logits = jnp.dot(h, w2_ref[...],
                         preferred_element_type=jnp.float32) + b2_ref[...]  # (TB, 128)
        out_ref[...] = logits.astype(out_ref.dtype)


def sentiment_head(hidden_states, attention_mask, w1, b1, w2, b2):
    """hidden_states: (B, S, H), attention_mask: (B, S) -> logits (B, NUM_CLASSES) f32."""
    B, S, H = hidden_states.shape
    n_cls = w2.shape[1]
    itemsize = jnp.dtype(hidden_states.dtype).itemsize

    # ---- tile sizing ------------------------------------------------------
    if S <= 512:
        TS, S_pad = S, S                     # single seq block -> no (8,128) tiling constraint
    else:
        TS = 256                             # multiple of 8 (sublane) and 128 (lane)
        S_pad = _round_up(S, TS)

    max_tb = max(8, (_EMB_TILE_BUDGET // (TS * H * itemsize)) // 8 * 8)
    TB = min(128, max_tb, _round_up(B, 8))   # always a multiple of 8
    B_pad = _round_up(B, TB)
    nb, ns = B_pad // TB, S_pad // TS

    # ---- padding (only when needed; padded rows/tokens have mask == 0) ----
    if (B_pad, S_pad) != (B, S):
        hidden_states = jnp.pad(hidden_states,
                                ((0, B_pad - B), (0, S_pad - S), (0, 0)))
        attention_mask = jnp.pad(attention_mask,
                                 ((0, B_pad - B), (0, S_pad - S)))
    mask_f = attention_mask.astype(jnp.float32)

    # Lane-dense output path: pad the classifier to 128 output lanes.
    b1r = jnp.reshape(b1, (1, FC1_OUT)).astype(jnp.float32)
    w2p = jnp.pad(w2.astype(jnp.float32), ((0, 0), (0, OUT_PAD - n_cls)))
    b2p = jnp.pad(jnp.reshape(b2, (1, n_cls)).astype(jnp.float32),
                  ((0, 0), (0, OUT_PAD - n_cls)))

    flops = int(2 * B_pad * S_pad * H            # masked sum
                + 2 * B_pad * H * FC1_OUT        # fc1
                + 2 * B_pad * FC1_OUT * OUT_PAD)  # fc2 (padded)
    bytes_accessed = int(B_pad * S_pad * H * itemsize + B_pad * S_pad * 4
                         + w1.size * jnp.dtype(w1.dtype).itemsize
                         + b1r.size * 4 + w2p.size * 4 + b2p.size * 4
                         + B_pad * OUT_PAD * 4)

    out_padded = pl.pallas_call(
        _head_kernel,
        out_shape=jax.ShapeDtypeStruct((B_pad, OUT_PAD), jnp.float32),
        grid_spec=pltpu.PrefetchScalarGridSpec(
            num_scalar_prefetch=0,
            grid=(nb, ns),
            in_specs=[
                pl.BlockSpec((TB, TS, H), lambda b, s: (b, s, 0)),      # hidden states tile
                pl.BlockSpec((TB, TS), lambda b, s: (b, s)),            # mask tile
                pl.BlockSpec((H, FC1_OUT), lambda b, s: (0, 0)),        # w1 (resident)
                pl.BlockSpec((1, FC1_OUT), lambda b, s: (0, 0)),        # b1 (resident)
                pl.BlockSpec((FC1_OUT, OUT_PAD), lambda b, s: (0, 0)),  # w2 padded (resident)
                pl.BlockSpec((1, OUT_PAD), lambda b, s: (0, 0)),        # b2 padded (resident)
            ],
            out_specs=pl.BlockSpec((TB, OUT_PAD), lambda b, s: (b, 0)),
            scratch_shapes=[
                pltpu.VMEM((TB, H), jnp.float32),   # masked-sum accumulator
                pltpu.VMEM((TB, 1), jnp.float32),   # mask-count accumulator
            ],
        ),
        compiler_params=pltpu.CompilerParams(
            dimension_semantics=("parallel", "arbitrary"),
            vmem_limit_bytes=_VMEM_LIMIT,
        ),
        cost_estimate=pl.CostEstimate(
            flops=flops, transcendentals=int(B_pad), bytes_accessed=bytes_accessed),
    )(hidden_states, mask_f, w1, b1r, w2p, b2p)

    return out_padded[:B, :n_cls]


if __name__ == "__main__":
    key = jax.random.PRNGKey(0)
    kh, kw1, kb1, kw2, kb2 = jax.random.split(key, 5)

    B, S = 8, 16   # BATCH_SIZE=8; short sequence for the smoke test

    # Stand-in for PhoBERT's last_hidden_state (see TODO(synk) above).
    hidden_states = jax.random.normal(kh, (B, S, HIDDEN), jnp.float32) * 0.02

    # Attention mask: first `lengths[b]` tokens valid, rest padding.
    lengths = 4 + (jnp.arange(B) % (S - 4))
    attention_mask = (jnp.arange(S)[None, :] < lengths[:, None]).astype(jnp.float32)

    # nn.Linear-style deterministic init (weights stored as (in, out)).
    bound1 = 1.0 / jnp.sqrt(HIDDEN)
    bound2 = 1.0 / jnp.sqrt(FC1_OUT)
    w1 = jax.random.uniform(kw1, (HIDDEN, FC1_OUT), jnp.float32, -bound1, bound1)
    b1 = jax.random.uniform(kb1, (FC1_OUT,), jnp.float32, -bound1, bound1)
    w2 = jax.random.uniform(kw2, (FC1_OUT, NUM_CLASSES), jnp.float32, -bound2, bound2)
    b2 = jax.random.uniform(kb2, (NUM_CLASSES,), jnp.float32, -bound2, bound2)

    logits = sentiment_head(hidden_states, attention_mask, w1, b1, w2, b2)
    jax.block_until_ready(logits)

    # Pure-JAX reference: masked-mean pooling -> fc1 -> fc2 (dropout = identity).
    pooled_ref = (hidden_states * attention_mask[:, :, None]).sum(1) / jnp.maximum(
        attention_mask.sum(1, keepdims=True), 1.0)
    logits_ref = (pooled_ref @ w1 + b1) @ w2 + b2

    assert logits.shape == (B, NUM_CLASSES)
    assert jnp.allclose(logits, logits_ref, atol=2e-4, rtol=1e-3), float(
        jnp.max(jnp.abs(logits - logits_ref)))

    print("KERNEL_OK")
</pallas_src>

<mosaic_0001>
module attributes {stable_mosaic.version = 11 : i64} {
  func.func @_head_kernel(%arg0: i32, %arg1: i32, %arg2: memref<8x16x768xf32, #tpu.memory_space<vmem>>, %arg3: memref<8x16xf32, #tpu.memory_space<vmem>>, %arg4: memref<768x256xf32, #tpu.memory_space<vmem>>, %arg5: memref<1x256xf32, #tpu.memory_space<vmem>>, %arg6: memref<256x128xf32, #tpu.memory_space<vmem>>, %arg7: memref<1x128xf32, #tpu.memory_space<vmem>>, %arg8: memref<8x128xf32, #tpu.memory_space<vmem>>, %arg9: memref<8x768xf32, #tpu.memory_space<vmem>>, %arg10: memref<8x1xf32, #tpu.memory_space<vmem>>) attributes {dimension_semantics = [#tpu.dimension_semantics<parallel>, #tpu.dimension_semantics<arbitrary>], iteration_bounds = array<i64: 1, 1>, scalar_prefetch = 0 : i64, scratch_operands = 2 : i64, tpu.core_type = #tpu.core_type<tc>, window_params = [{transform_indices = @transform_0, window_bounds = array<i64: 8, 16, 768>}, {transform_indices = @transform_1, window_bounds = array<i64: 8, 16>}, {pipeline_mode = #tpu.pipeline_mode<synchronous>, transform_indices = @transform_2, window_bounds = array<i64: 768, 256>}, {pipeline_mode = #tpu.pipeline_mode<synchronous>, transform_indices = @transform_3, window_bounds = array<i64: 1, 256>}, {pipeline_mode = #tpu.pipeline_mode<synchronous>, transform_indices = @transform_4, window_bounds = array<i64: 256, 128>}, {pipeline_mode = #tpu.pipeline_mode<synchronous>, transform_indices = @transform_5, window_bounds = array<i64: 1, 128>}, {transform_indices = @transform_6, window_bounds = array<i64: 8, 128>}]} {
    %c0_i32 = arith.constant 0 : i32
    %0 = arith.cmpi eq, %arg1, %c0_i32 : i32
    %1 = arith.extui %0 : i1 to i32
    %c0_i32_0 = arith.constant 0 : i32
    %2 = arith.cmpi ne, %1, %c0_i32_0 : i32
    scf.if %2 {
      %cst_16 = arith.constant 0.000000e+00 : f32
      %20 = vector.broadcast %cst_16 : f32 to vector<8x768xf32>
      %c0_17 = arith.constant 0 : index
      %c0_18 = arith.constant 0 : index
      %21 = vector.load %arg9[%c0_17, %c0_18] : memref<8x768xf32, #tpu.memory_space<vmem>>, vector<8x768xf32>
      tpu.vector_store %arg9[%c0_17, %c0_18], %20 {strides = array<i32>} : memref<8x768xf32, #tpu.memory_space<vmem>>, vector<8x768xf32>,
      %cst_19 = arith.constant 0.000000e+00 : f32
      %22 = vector.broadcast %cst_19 : f32 to vector<8x1xf32>
      %c0_20 = arith.constant 0 : index
      %c0_21 = arith.constant 0 : index
      %23 = vector.load %arg10[%c0_20, %c0_21] : memref<8x1xf32, #tpu.memory_space<vmem>>, vector<8x1xf32>
      tpu.vector_store %arg10[%c0_20, %c0_21], %22 {strides = array<i32>} : memref<8x1xf32, #tpu.memory_space<vmem>>, vector<8x1xf32>,
    } else {
    }
    %c0 = arith.constant 0 : index
    %c0_1 = arith.constant 0 : index
    %c0_2 = arith.constant 0 : index
    %3 = vector.load %arg2[%c0, %c0_1, %c0_2] : memref<8x16x768xf32, #tpu.memory_space<vmem>>, vector<8x16x768xf32>
    %c0_3 = arith.constant 0 : index
    %c0_4 = arith.constant 0 : index
    %4 = vector.load %arg3[%c0_3, %c0_4] : memref<8x16xf32, #tpu.memory_space<vmem>>, vector<8x16xf32>
    %c0_5 = arith.constant 0 : index
    %c0_6 = arith.constant 0 : index
    %5 = vector.load %arg9[%c0_5, %c0_6] : memref<8x768xf32, #tpu.memory_space<vmem>>, vector<8x768xf32>
    %6 = vector.shape_cast %4 : vector<8x16xf32> to vector<8x16x1xf32>
    %7 = vector.broadcast %6 : vector<8x16x1xf32> to vector<8x16x768xf32>
    %8 = arith.mulf %3, %7 : vector<8x16x768xf32>
    %cst = arith.constant dense<0.000000e+00> : vector<8x768xf32>
    %9 = vector.multi_reduction <add>, %8, %cst [1] : vector<8x16x768xf32> to vector<8x768xf32>
    %10 = arith.addf %5, %9 : vector<8x768xf32>
    %c0_7 = arith.constant 0 : index
    %c0_8 = arith.constant 0 : index
    %11 = vector.load %arg9[%c0_7, %c0_8] : memref<8x768xf32, #tpu.memory_space<vmem>>, vector<8x768xf32>
    tpu.vector_store %arg9[%c0_7, %c0_8], %10 {strides = array<i32>} : memref<8x768xf32, #tpu.memory_space<vmem>>, vector<8x768xf32>,
    %c0_9 = arith.constant 0 : index
    %c0_10 = arith.constant 0 : index
    %12 = vector.load %arg10[%c0_9, %c0_10] : memref<8x1xf32, #tpu.memory_space<vmem>>, vector<8x1xf32>
    %cst_11 = arith.constant dense<0.000000e+00> : vector<8xf32>
    %13 = vector.multi_reduction <add>, %4, %cst_11 [1] : vector<8x16xf32> to vector<8xf32>
    %14 = vector.shape_cast %13 : vector<8xf32> to vector<8x1xf32>
    %15 = arith.addf %12, %14 : vector<8x1xf32>
    %c0_12 = arith.constant 0 : index
    %c0_13 = arith.constant 0 : index
    %16 = vector.load %arg10[%c0_12, %c0_13] : memref<8x1xf32, #tpu.memory_space<vmem>>, vector<8x1xf32>
    tpu.vector_store %arg10[%c0_12, %c0_13], %15 {strides = array<i32>} : memref<8x1xf32, #tpu.memory_space<vmem>>, vector<8x1xf32>,
    %c0_i32_14 = arith.constant 0 : i32
    %17 = arith.cmpi eq, %arg1, %c0_i32_14 : i32
    %18 = arith.extui %17 : i1 to i32
    %c0_i32_15 = arith.constant 0 : i32
    %19 = arith.cmpi ne, %18, %c0_i32_15 : i32
    scf.if %19 {
      %c0_16 = arith.constant 0 : index
      %c0_17 = arith.constant 0 : index
      %20 = vector.load %arg10[%c0_16, %c0_17] : memref<8x1xf32, #tpu.memory_space<vmem>>, vector<8x1xf32>
      %cst_18 = arith.constant 1.000000e+00 : f32
      %21 = vector.broadcast %cst_18 : f32 to vector<8x1xf32>
      %22 = arith.maximumf %20, %21 : vector<8x1xf32>
      %23 = tpu.reciprocal %22 {approx = true} : vector<8x1xf32> -> vector<8x1xf32>
      %c0_19 = arith.constant 0 : index
      %c0_20 = arith.constant 0 : index
      %24 = vector.load %arg9[%c0_19, %c0_20] : memref<8x768xf32, #tpu.memory_space<vmem>>, vector<8x768xf32>
      %25 = vector.broadcast %23 : vector<8x1xf32> to vector<8x768xf32>
      %26 = arith.mulf %24, %25 : vector<8x768xf32>
      %c0_21 = arith.constant 0 : index
      %c0_22 = arith.constant 0 : index
      %27 = vector.load %arg4[%c0_21, %c0_22] : memref<768x256xf32, #tpu.memory_space<vmem>>, vector<768x256xf32>
      %cst_23 = arith.constant dense<0.000000e+00> : vector<8x256xf32>
      %28 = tpu.matmul %26, %27, %cst_23 {dimension_numbers = #tpu.dot_dimension_numbers<[1], [0], [0], [1], [0, 0, 1, 1], [], []>} : vector<8x768xf32>, vector<768x256xf32>, vector<8x256xf32> -> vector<8x256xf32>
      %c0_24 = arith.constant 0 : index
      %c0_25 = arith.constant 0 : index
      %29 = vector.load %arg5[%c0_24, %c0_25] : memref<1x256xf32, #tpu.memory_space<vmem>>, vector<1x256xf32>
      %30 = vector.broadcast %29 : vector<1x256xf32> to vector<8x256xf32>
      %31 = arith.addf %28, %30 : vector<8x256xf32>
      %c0_26 = arith.constant 0 : index
      %c0_27 = arith.constant 0 : index
      %32 = vector.load %arg6[%c0_26, %c0_27] : memref<256x128xf32, #tpu.memory_space<vmem>>, vector<256x128xf32>
      %cst_28 = arith.constant dense<0.000000e+00> : vector<8x128xf32>
      %33 = tpu.matmul %31, %32, %cst_28 {dimension_numbers = #tpu.dot_dimension_numbers<[1], [0], [0], [1], [0, 0, 1, 1], [], []>} : vector<8x256xf32>, vector<256x128xf32>, vector<8x128xf32> -> vector<8x128xf32>
      %c0_29 = arith.constant 0 : index
      %c0_30 = arith.constant 0 : index
      %34 = vector.load %arg7[%c0_29, %c0_30] : memref<1x128xf32, #tpu.memory_space<vmem>>, vector<1x128xf32>
      %35 = vector.broadcast %34 : vector<1x128xf32> to vector<8x128xf32>
      %36 = arith.addf %33, %35 : vector<8x128xf32>
      %c0_31 = arith.constant 0 : index
      %c0_32 = arith.constant 0 : index
      %37 = vector.load %arg8[%c0_31, %c0_32] : memref<8x128xf32, #tpu.memory_space<vmem>>, vector<8x128xf32>
      tpu.vector_store %arg8[%c0_31, %c0_32], %36 {strides = array<i32>} : memref<8x128xf32, #tpu.memory_space<vmem>>, vector<8x128xf32>,
    } else {
    }
    return
  }
  func.func @transform_0(%arg0: i32, %arg1: i32) -> (i32, i32, i32) {
    %c0_i32 = arith.constant 0 : i32
    %c0_i32_0 = arith.constant 0 : i32
    return %arg0, %arg1, %c0_i32 : i32, i32, i32
  }
  func.func @transform_1(%arg0: i32, %arg1: i32) -> (i32, i32) {
    %c0_i32 = arith.constant 0 : i32
    return %arg0, %arg1 : i32, i32
  }
  func.func @transform_2(%arg0: i32, %arg1: i32) -> (i32, i32) {
    %c0_i32 = arith.constant 0 : i32
    %c0_i32_0 = arith.constant 0 : i32
    %c0_i32_1 = arith.constant 0 : i32
    return %c0_i32, %c0_i32_0 : i32, i32
  }
  func.func @transform_3(%arg0: i32, %arg1: i32) -> (i32, i32) {
    %c0_i32 = arith.constant 0 : i32
    %c0_i32_0 = arith.constant 0 : i32
    %c0_i32_1 = arith.constant 0 : i32
    return %c0_i32, %c0_i32_0 : i32, i32
  }
  func.func @transform_4(%arg0: i32, %arg1: i32) -> (i32, i32) {
    %c0_i32 = arith.constant 0 : i32
    %c0_i32_0 = arith.constant 0 : i32
    %c0_i32_1 = arith.constant 0 : i32
    return %c0_i32, %c0_i32_0 : i32, i32
  }
  func.func @transform_5(%arg0: i32, %arg1: i32) -> (i32, i32) {
    %c0_i32 = arith.constant 0 : i32
    %c0_i32_0 = arith.constant 0 : i32
    %c0_i32_1 = arith.constant 0 : i32
    return %c0_i32, %c0_i32_0 : i32, i32
  }
  func.func @transform_6(%arg0: i32, %arg1: i32) -> (i32, i32) {
    %c0_i32 = arith.constant 0 : i32
    %c0_i32_0 = arith.constant 0 : i32
    return %arg0, %c0_i32 : i32, i32
  }
}

</mosaic_0001>

<bundles_post_ra>
// kernel: tpu_custom_call.1
= control target key start
LH: loop header
LB: loop body
LE: loop exit
PB: predicated region body
PF: predicated region fallthrough
CT: control target
= control target key end

     0   :  { %11 = vsyncpa [#allocation5], 0  ;;  %s2336_s0 = inlined_call_operand.hbm [shape: f32[8,16,768], index: 0, kind: input, shape index: {}]   ;;  %s2337_s1 = inlined_call_operand.hbm [shape: f32[8,16], index: 1, kind: input, shape index: {}]   ;;  %s2338_s2 = inlined_call_operand.hbm [shape: f32[768,256], index: 2, kind: input, shape index: {}]   ;;  %s2339_s3 = inlined_call_operand.vmem [shape: f32[1,256], index: 3, kind: input, shape index: {}]   ;;  %s2340_s4 = inlined_call_operand.hbm [shape: f32[256,128], index: 4, kind: input, shape index: {}]   ;;  %s2341_s5 = inlined_call_operand.vmem [shape: f32[1,128], index: 5, kind: input, shape index: {}]   ;;  %s2342_s6 = inlined_call_operand.hbm [shape: f32[8,128], index: 6, kind: output, shape index: {}]  }
   0x1   :  { %12 = vsyncpa [#allocation8], 0 }
   0x2   :  { %13 = vsyncpa [#allocation11], 0 }
   0x3   :  { %14 = vsyncpa [#allocation6], 0  ;;  %s1802_s21 = smov [#allocation7]   ;;  %s1803_s23 = smov [#allocation4]  }
   0x4   :  { %s33_s22 = sshll.u32 %s1802_s21, 4  ;;  %s20_s24 = sshll.u32 %s1803_s23, 4  ;;  %s34_s22 = int_to_ptr.vmem [resolvable:$true] %s33_s22  ;;  %s1850_s24 = int_to_ptr.vmem [resolvable:$true] %s20_s24 }
   0x5   :  { %s1684_s27 = scalar_lea.hbm %s2337_s1, 128 }
   0x6   :  { %p1685_p0 = scmp.ne.s32.totalorder %s2337_s1, %s1684_s27  ;;  %p1688_p1 = scmp.lt.u32.totalorder %s1684_s27, %s2337_s1 }
   0x8   :  { %p1690_p2 = pnand %p1688_p1, %p1685_p0 }
   0xa   :  { %1693 = shalt.err (!%p1690_p2)
}
   0xb   :  { %s1694_s8 = scalar_lea.vmem %s34_s22, 128  ;;  %p1699_p4 = scmp.lt.s32.totalorder %s34_s22, %s34_s22 }
   0xc   :  { %p1695_p3 = scmp.ne.s32.totalorder %s34_s22, %s1694_s8  ;;  %p1700_p5 = scmp.lt.s32.totalorder %s1694_s8, %s1694_s8 }
   0xe   :  { %p1701_p6 = por %p1700_p5, %p1699_p4 }
  0x10   :  { %p1702_p7 = pnand %p1701_p6, %p1695_p3 }
  0x12   :  { %1705 = shalt.err (!%p1702_p7)
}
  0x13   :  { %36 = dma.hbm_to_vmem [thread:$0]  %s2337_s1, 128, %s34_s22, [#allocation8]  }
  0x14   :  { %s1706_s13 = scalar_lea.hbm %s2336_s0, 12288 }
  0x15   :  { %p1707_p8 = scmp.ne.s32.totalorder %s2336_s0, %s1706_s13  ;;  %p1710_p9 = scmp.lt.u32.totalorder %s1706_s13, %s2336_s0 }
  0x17   :  { %p1712_p10 = pnand %p1710_p9, %p1707_p8 }
  0x19   :  { %1715 = shalt.err (!%p1712_p10)
}
  0x1a   :  { %s1716_s18 = scalar_lea.vmem %s1850_s24, 12288  ;;  %p1721_p12 = scmp.lt.s32.totalorder %s1850_s24, %s1850_s24 }
  0x1b   :  { %p1717_p11 = scmp.ne.s32.totalorder %s1850_s24, %s1716_s18  ;;  %p1722_p13 = scmp.lt.s32.totalorder %s1716_s18, %s1716_s18 }
  0x1d   :  { %p1723_p0 = por %p1722_p13, %p1721_p12 }
  0x1f   :  { %p1724_p1 = pnand %p1723_p0, %p1717_p11 }
  0x21   :  { %1727 = shalt.err (!%p1724_p1)
}
  0x22   :  { %s1804_s1 = smov 768   ;;  %s1805_s19 = smov 48  }
  0x23   :  { %26 = dma.hbm_to_vmem [thread:$0]  %s2336_s0, 12288, %s1850_s24, [#allocation5], %s1804_s1, %s1804_s1, %s1805_s19  }
  0x24   :  { %s1806_s22 = smov [#allocation9]   ;;  %s1728_s27 = scalar_lea.hbm %s2338_s2, 24576 }
  0x25   :  { %s42_s23 = sshll.u32 %s1806_s22, 4  ;;  %p1729_p2 = scmp.ne.s32.totalorder %s2338_s2, %s1728_s27  ;;  %s43_s23 = int_to_ptr.vmem [resolvable:$true] %s42_s23 }
  0x26   :  { %p1732_p3 = scmp.lt.u32.totalorder %s1728_s27, %s2338_s2 }
  0x28   :  { %p1734_p4 = pnand %p1732_p3, %p1729_p2 }
  0x2a   :  { %1737 = shalt.err (!%p1734_p4)
}
  0x2b   :  { %s1738_s8 = scalar_lea.vmem %s43_s23, 24576  ;;  %p1743_p6 = scmp.lt.s32.totalorder %s43_s23, %s43_s23 }
  0x2c   :  { %p1739_p5 = scmp.ne.s32.totalorder %s43_s23, %s1738_s8  ;;  %p1744_p7 = scmp.lt.s32.totalorder %s1738_s8, %s1738_s8 }
  0x2e   :  { %p1745_p8 = por %p1744_p7, %p1743_p6 }
  0x30   :  { %p1746_p9 = pnand %p1745_p8, %p1739_p5 }
  0x32   :  { %1749 = shalt.err (!%p1746_p9)
}
  0x33   :  { %s1807_s0 = smov 256   ;;  %s1808_s24 = smov 16  }
  0x34   :  { %48 = dma.hbm_to_vmem [thread:$0]  %s2338_s2, 24576, %s43_s23, [#allocation8], %s1807_s0, %s1807_s0, %s1808_s24  }
  0x35   :  { %s1809_s11 = smov [#allocation10]   ;;  %s1750_s15 = scalar_lea.hbm %s2340_s4, 4096 }
  0x36   :  { %s56_s12 = sshll.u32 %s1809_s11, 4  ;;  %p1751_p10 = scmp.ne.s32.totalorder %s2340_s4, %s1750_s15  ;;  %s57_s12 = int_to_ptr.vmem [resolvable:$true] %s56_s12 }
  0x37   :  { %p1754_p11 = scmp.lt.u32.totalorder %s1750_s15, %s2340_s4 }
  0x39   :  { %p1756_p12 = pnand %p1754_p11, %p1751_p10 }
  0x3b   :  { %1759 = shalt.err (!%p1756_p12)
}
  0x3c   :  { %s1760_s19 = scalar_lea.vmem %s57_s12, 4096  ;;  %p1765_p0 = scmp.lt.s32.totalorder %s57_s12, %s57_s12 }
  0x3d   :  { %p1761_p13 = scmp.ne.s32.totalorder %s57_s12, %s1760_s19  ;;  %p1766_p1 = scmp.lt.s32.totalorder %s1760_s19, %s1760_s19 }
  0x3f   :  { %p1767_p2 = por %p1766_p1, %p1765_p0 }
  0x41   :  { %p1768_p3 = pnand %p1767_p2, %p1761_p13 }
  0x43   :  { %1771 = shalt.err (!%p1768_p3)
}
  0x44   :  { %s1810_s2 = smov 128   ;;  %s1811_s20 = smov 8  }
  0x45   :  { %62 = dma.hbm_to_vmem [thread:$0]  %s2340_s4, 4096, %s57_s12, [#allocation11], %s1810_s2, %s1810_s2, %s1811_s20  }
  0x46   :  { %1794 = dma.done.wait [#allocation5], 12288  }
  0x47   :  { %1795 = vsyncadd [#allocation5], 4294955008 }
  0x48   :  { %1796 = dma.done.wait [#allocation8], 24704  }
  0x49   :  { %1797 = vsyncadd [#allocation8], 4294942592 }
  0x4a   :  { %1798 = dma.done.wait [#allocation11], 4096  }
  0x4b   :  { %1799 = vsyncadd [#allocation11], 4294963200  ;;  %v192_v0 = vlaneseq  ;;  %vm87_vm0 = vcmask 7168   ;;  %v1812_v1 = vmov 0.0   ;;  %vm828_vm1 = vcmask 130048   ;;  %v185_v5 = vld [vmem:[#allocation7] sm:$0xff] }
  0x4c   :  { %88 = vst.msk [vmem:[#allocation3] sm:$0xff] %vm87_vm0, %v1812_v1  ;;  %v829_v6 = vsel %vm828_vm1, %v185_v5, 0.0  ;;  %v1813_v13 = vmov 0   ;;  %v923_v22 = vld [vmem:[#allocation9 + $0x208] sm:$0xff]  ;;  %v925_v23 = vld [vmem:[#allocation9 + $0x218] sm:$0xff]  ;;  %v922_v27 = vld [vmem:[#allocation9 + $0x200] sm:$0xff] }
  0x4d   :  { %v1906_v2 = vshrl.u32 %v192_v0, 7  ;;  %830 = vadd.xlane.f32.xlu0 %v829_v6  ;;  %v1502_v24 = vpack.c.bf16 %v925_v23, %v923_v22  ;;  %v859_v25 = vld [vmem:[#allocation9 + $0x8] sm:$0xff]  ;;  %v861_v26 = vld [vmem:[#allocation9 + $0x18] sm:$0xff]  ;;  %v924_v29 = vld [vmem:[#allocation9 + $0x210] sm:$0xff]  ;;  %vm760_vm2 = vcmask 1041409   ;;  %vm762_vm3 = vcmask 1042434  }
  0x4e   :  { %1681 = vset.pattern.permute.xlu0 %v1813_v13  ;;  %v1438_v28 = vpack.c.bf16 %v861_v26, %v859_v25  ;;  %v858_v30 = vld [vmem:[#allocation9] sm:$0xff]  ;;  %v860_v31 = vld [vmem:[#allocation9 + $0x10] sm:$0xff]  ;;  %v1504_v32 = vpack.c.bf16 %v924_v29, %v922_v27  ;;  %v927_v34 = vld [vmem:[#allocation9 + $0x228] sm:$0xff]  ;;  %vm764_vm4 = vcmask 1043459   ;;  %vm766_vm5 = vcmask 1044484  }
  0x4f   :  { %2351 = vst [vmem:[#allocation17_spill] sm:$0xff] %v1906_v2  ;;  %v2344_v3 = vsub.s32 0, %v1906_v2  ;;  %v2343_v4 = vsub.s32 1, %v1906_v2  ;;  %v216_v9 = vsub.s32 2, %v1906_v2  ;;  %v227_v11 = vsub.s32 3, %v1906_v2  ;;  %1503 = vmatprep.subr.bf16.mxu0 %v1502_v24  ;;  %v929_v35 = vld [vmem:[#allocation9 + $0x238] sm:$0xff] }
  0x50   :  { %v238_v14 = vsub.s32 4, %v1906_v2  ;;  %v249_v16 = vsub.s32 5, %v1906_v2  ;;  %v260_v18 = vsub.s32 6, %v1906_v2  ;;  %v271_v20 = vsub.s32 7, %v1906_v2  ;;  %1439 = vmatprep.subr.bf16.mxu1 %v1438_v28  ;;  %1505 = vmatpush1.bf16.msra.mxu0 %v1504_v32  ;;  %v863_v37 = vld [vmem:[#allocation9 + $0x28] sm:$0xff]  ;;  %v865_v38 = vld [vmem:[#allocation9 + $0x38] sm:$0xff] }
  0x51   :  { %v195_v7 = vrot.slane %v185_v5, %v2344_v3  ;;  %v206_v8 = vrot.slane %v185_v5, %v2343_v4  ;;  %v217_v10 = vrot.slane %v185_v5, %v216_v9  ;;  %v228_v12 = vrot.slane %v185_v5, %v227_v11  ;;  %v926_v39 = vld [vmem:[#allocation9 + $0x220] sm:$0xff]  ;;  %v928_v40 = vld [vmem:[#allocation9 + $0x230] sm:$0xff]  ;;  %v931_v45 = vld [vmem:[#allocation9 + $0x248] sm:$0xff] }
  0x52   :  { %v239_v15 = vrot.slane %v185_v5, %v238_v14  ;;  %v250_v17 = vrot.slane %v185_v5, %v249_v16  ;;  %v261_v19 = vrot.slane %v185_v5, %v260_v18  ;;  %v272_v21 = vrot.slane %v185_v5, %v271_v20  ;;  %v862_v43 = vld [vmem:[#allocation9 + $0x20] sm:$0xff]  ;;  %v864_v44 = vld [vmem:[#allocation9 + $0x30] sm:$0xff]  ;;  %v933_v47 = vld [vmem:[#allocation9 + $0x258] sm:$0xff] }
  0x53   :  { %201 = vbcast.lane.b32.xlu1 %v195_v7, 264  ;;  %v1440_v33 = vpack.c.bf16 %v860_v31, %v858_v30  ;;  %v1506_v36 = vpack.c.bf16 %v929_v35, %v927_v34  ;;  %v1442_v41 = vpack.c.bf16 %v865_v38, %v863_v37  ;;  %v1508_v42 = vpack.c.bf16 %v928_v40, %v926_v39  ;;  %v867_v48 = vld [vmem:[#allocation9 + $0x48] sm:$0xff]  ;;  %v869_v49 = vld [vmem:[#allocation9 + $0x58] sm:$0xff]  ;;  %v930_v52 = vld [vmem:[#allocation9 + $0x240] sm:$0xff] }
  0x54   :  { %v1444_v46 = vpack.c.bf16 %v864_v44, %v862_v43  ;;  %v1510_v50 = vpack.c.bf16 %v933_v47, %v931_v45  ;;  %v1446_v51 = vpack.c.bf16 %v869_v49, %v867_v48  ;;  %v932_v53 = vld [vmem:[#allocation9 + $0x250] sm:$0xff]  ;;  %v866_v54 = vld [vmem:[#allocation9 + $0x40] sm:$0xff]  ;;  %v935_v57 = vld [vmem:[#allocation9 + $0x268] sm:$0xff]  ;;  %vm768_vm6 = vcmask 1045509  }
  0x55   :  { %1441 = vmatpush1.bf16.msra.mxu1 %v1440_v33  ;;  %1507 = vmatprep.subr.bf16.mxu0 %v1506_v36  ;;  %v1512_v55 = vpack.c.bf16 %v932_v53, %v930_v52  ;;  %v868_v56 = vld [vmem:[#allocation9 + $0x50] sm:$0xff]  ;;  %v937_v58 = vld [vmem:[#allocation9 + $0x278] sm:$0xff]  ;;  %v871_v61 = vld [vmem:[#allocation9 + $0x68] sm:$0xff]  ;;  %vm770_vm7 = vcmask 1046534   ;;  %vm772_vm8 = vcmask 1047559  }
  0x56   :  { %1443 = vmatprep.subr.bf16.mxu1 %v1442_v41  ;;  %1509 = vmatpush1.bf16.msra.mxu0 %v1508_v42  ;;  %v1448_v59 = vpack.c.bf16 %v868_v56, %v866_v54  ;;  %v1514_v60 = vpack.c.bf16 %v937_v58, %v935_v57  ;;  %v873_v62 = vld [vmem:[#allocation9 + $0x78] sm:$0xff]  ;;  %v934_v63 = vld [vmem:[#allocation9 + $0x260] sm:$0xff]  ;;  %v936_v1 = vld [vmem:[#allocation9 + $0x270] sm:$0xff] }
  0x57   :  { %208 = vbcast.lane.b32.xlu1 %v206_v8, 256  ;;  %1511 = vmatprep.subr.bf16.mxu0 %v1510_v50  ;;  %v1450_v0 = vpack.c.bf16 %v873_v62, %v871_v61  ;;  %v870_v5 = vld [vmem:[#allocation9 + $0x60] sm:$0xff]  ;;  %v872_v6 = vld [vmem:[#allocation9 + $0x70] sm:$0xff]  ;;  %v941_v9 = vld [vmem:[#allocation9 + $0x298] sm:$0xff] }
  0x58   :  { %v1452_v11 = vpack.c.bf16 %v872_v6, %v870_v5  ;;  %v877_v13 = vld [vmem:[#allocation9 + $0x98] sm:$0xff]  ;;  %v938_v14 = vld [vmem:[#allocation9 + $0x280] sm:$0xff]  ;;  %v876_v18 = vld [vmem:[#allocation9 + $0x90] sm:$0xff] }
  0x59   :  { %1445 = vmatpush1.bf16.msra.mxu1 %v1444_v46  ;;  %v945_v20 = vld [vmem:[#allocation9 + $0x2b8] sm:$0xff]  ;;  %v942_v26 = vld [vmem:[#allocation9 + $0x2a0] sm:$0xff]  ;;  %v944_v27 = vld [vmem:[#allocation9 + $0x2b0] sm:$0xff] }
  0x5a   :  { %1447 = vmatprep.subr.bf16.mxu1 %v1446_v51  ;;  %1513 = vmatpush1.bf16.msra.mxu0 %v1512_v55  ;;  %v881_v22 = vld [vmem:[#allocation9 + $0xb8] sm:$0xff]  ;;  %v878_v28 = vld [vmem:[#allocation9 + $0xa0] sm:$0xff]  ;;  %v880_v30 = vld [vmem:[#allocation9 + $0xb0] sm:$0xff]  ;;  %v1524_v35 = vpack.c.bf16 %v944_v27, %v942_v26 }
  0x5b   :  { %212 = vbcast.lane.b32.xlu1 %v206_v8, 264  ;;  %v939_v8 = vld [vmem:[#allocation9 + $0x288] sm:$0xff]  ;;  %1515 = vmatprep.subr.bf16.mxu0 %v1514_v60  ;;  %v949_v32 = vld [vmem:[#allocation9 + $0x2d8] sm:$0xff]  ;;  %v1460_v36 = vpack.c.bf16 %v880_v30, %v878_v28  ;;  %v946_v38 = vld [vmem:[#allocation9 + $0x2c0] sm:$0xff] }
  0x5c   :  { %v947_v31 = vld [vmem:[#allocation9 + $0x2c8] sm:$0xff]  ;;  %v885_v34 = vld [vmem:[#allocation9 + $0xd8] sm:$0xff]  ;;  %v948_v39 = vld [vmem:[#allocation9 + $0x2d0] sm:$0xff] }
  0x5d   :  { %1449 = vmatpush1.bf16.msra.mxu1 %v1448_v59  ;;  %v883_v33 = vld [vmem:[#allocation9 + $0xc8] sm:$0xff]  ;;  %v1526_v37 = vpack.c.bf16 %v949_v32, %v947_v31  ;;  %v882_v40 = vld [vmem:[#allocation9 + $0xc0] sm:$0xff]  ;;  %v884_v42 = vld [vmem:[#allocation9 + $0xd0] sm:$0xff]  ;;  %v1528_v47 = vpack.c.bf16 %v948_v39, %v946_v38 }
  0x5e   :  { %1451 = vmatprep.subr.bf16.mxu1 %v1450_v0  ;;  %v1462_v41 = vpack.c.bf16 %v885_v34, %v883_v33  ;;  %v951_v43 = vld [vmem:[#allocation9 + $0x2e8] sm:$0xff]  ;;  %v953_v44 = vld [vmem:[#allocation9 + $0x2f8] sm:$0xff]  ;;  %v1464_v48 = vpack.c.bf16 %v884_v42, %v882_v40  ;;  %v950_v50 = vld [vmem:[#allocation9 + $0x2e0] sm:$0xff] }
  0x5f   :  { %219 = vbcast.lane.b32.xlu1 %v217_v10, 256  ;;  %v887_v45 = vld [vmem:[#allocation9 + $0xe8] sm:$0xff]  ;;  %v889_v46 = vld [vmem:[#allocation9 + $0xf8] sm:$0xff]  ;;  %v1530_v49 = vpack.c.bf16 %v953_v44, %v951_v43  ;;  %v952_v51 = vld [vmem:[#allocation9 + $0x2f0] sm:$0xff] }
  0x60   :  { %v886_v52 = vld [vmem:[#allocation9 + $0xe0] sm:$0xff]  ;;  %v1466_v53 = vpack.c.bf16 %v889_v46, %v887_v45  ;;  %v888_v54 = vld [vmem:[#allocation9 + $0xf0] sm:$0xff]  ;;  %v955_v55 = vld [vmem:[#allocation9 + $0x308] sm:$0xff]  ;;  %v1532_v59 = vpack.c.bf16 %v952_v51, %v950_v50 }
  0x61   :  { %1453 = vmatpush1.bf16.msra.mxu1 %v1452_v11  ;;  %v957_v56 = vld [vmem:[#allocation9 + $0x318] sm:$0xff]  ;;  %v891_v57 = vld [vmem:[#allocation9 + $0x108] sm:$0xff]  ;;  %v1468_v60 = vpack.c.bf16 %v888_v54, %v886_v52  ;;  %v954_v62 = vld [vmem:[#allocation9 + $0x300] sm:$0xff] }
  0x62   :  { %v893_v58 = vld [vmem:[#allocation9 + $0x118] sm:$0xff]  ;;  %v1534_v61 = vpack.c.bf16 %v957_v56, %v955_v55  ;;  %v890_v0 = vld [vmem:[#allocation9 + $0x100] sm:$0xff]  ;;  %v892_v5 = vld [vmem:[#allocation9 + $0x110] sm:$0xff] }
  0x63   :  { %223 = vbcast.lane.b32.xlu1 %v217_v10, 264  ;;  %197 = vbcast.lane.b32.xlu0 %v195_v7, 256  ;;  %v1516_v7 = vpack.c.bf16 %v936_v1, %v934_v63  ;;  %v875_v10 = vld [vmem:[#allocation9 + $0x88] sm:$0xff]  ;;  %v956_v63 = vld [vmem:[#allocation9 + $0x310] sm:$0xff]  ;;  %v1470_v1 = vpack.c.bf16 %v893_v58, %v891_v57  ;;  %v1472_v11 = vpack.c.bf16 %v892_v5, %v890_v0  ;;  %v898_v27 = vld [vmem:[#allocation9 + $0x140] sm:$0xff] }
  0x64   :  { %v1454_v16 = vpack.c.bf16 %v877_v13, %v875_v10  ;;  %v959_v6 = vld [vmem:[#allocation9 + $0x328] sm:$0xff]  ;;  %v1536_v10 = vpack.c.bf16 %v956_v63, %v954_v62  ;;  %v958_v13 = vld [vmem:[#allocation9 + $0x320] sm:$0xff]  ;;  %v964_v26 = vld [vmem:[#allocation9 + $0x350] sm:$0xff] }
  0x65   :  { %1517 = vmatpush1.bf16.msra.mxu0 %v1516_v7  ;;  %v961_v7 = vld [vmem:[#allocation9 + $0x338] sm:$0xff]  ;;  %v967_v30 = vld [vmem:[#allocation9 + $0x368] sm:$0xff]  ;;  %v966_v38 = vld [vmem:[#allocation9 + $0x360] sm:$0xff] }
  0x66   :  { %1455 = vmatprep.subr.bf16.mxu1 %v1454_v16  ;;  %v969_v31 = vld [vmem:[#allocation9 + $0x378] sm:$0xff]  ;;  %v903_v32 = vld [vmem:[#allocation9 + $0x168] sm:$0xff]  ;;  %v968_v39 = vld [vmem:[#allocation9 + $0x370] sm:$0xff] }
  0x67   :  { %230 = vbcast.lane.b32.xlu1 %v228_v12, 256  ;;  %241 = vbcast.lane.b32.xlu0 %v239_v15, 256  ;;  %v905_v33 = vld [vmem:[#allocation9 + $0x178] sm:$0xff]  ;;  %v902_v40 = vld [vmem:[#allocation9 + $0x160] sm:$0xff]  ;;  %v904_v42 = vld [vmem:[#allocation9 + $0x170] sm:$0xff] }
  0x68   :  { %v971_v43 = vld [vmem:[#allocation9 + $0x388] sm:$0xff]  ;;  %v973_v44 = vld [vmem:[#allocation9 + $0x398] sm:$0xff]  ;;  %v1484_v50 = vpack.c.bf16 %v904_v42, %v902_v40  ;;  %v970_v52 = vld [vmem:[#allocation9 + $0x380] sm:$0xff] }
  0x69   :  { %v907_v45 = vld [vmem:[#allocation9 + $0x188] sm:$0xff]  ;;  %v909_v46 = vld [vmem:[#allocation9 + $0x198] sm:$0xff]  ;;  %v1550_v51 = vpack.c.bf16 %v973_v44, %v971_v43  ;;  %v906_v54 = vld [vmem:[#allocation9 + $0x180] sm:$0xff] }
  0x6a   :  { %v1486_v55 = vpack.c.bf16 %v909_v46, %v907_v45  ;;  %v908_v56 = vld [vmem:[#allocation9 + $0x190] sm:$0xff]  ;;  %v975_v57 = vld [vmem:[#allocation9 + $0x3a8] sm:$0xff]  ;;  %v977_v58 = vld [vmem:[#allocation9 + $0x3b8] sm:$0xff] }
  0x6b   :  { %234 = vbcast.lane.b32.xlu1 %v228_v12, 264  ;;  %252 = vbcast.lane.b32.xlu0 %v250_v17, 256  ;;  %v1518_v12 = vpack.c.bf16 %v941_v9, %v939_v8  ;;  %v895_v8 = vld [vmem:[#allocation9 + $0x128] sm:$0xff]  ;;  %v897_v9 = vld [vmem:[#allocation9 + $0x138] sm:$0xff]  ;;  %v1488_v0 = vpack.c.bf16 %v908_v56, %v906_v54  ;;  %v974_v5 = vld [vmem:[#allocation9 + $0x3a0] sm:$0xff] }
  0x6c   :  { %v1474_v16 = vpack.c.bf16 %v897_v9, %v895_v8  ;;  %v910_v9 = vld [vmem:[#allocation9 + $0x1a0] sm:$0xff]  ;;  %v827_v43 = vld [vmem:[#allocation3] sm:$0xff] }
  0x6d   :  { %1519 = vmatprep.subr.bf16.mxu0 %v1518_v12  ;;  %v1538_v12 = vpack.c.bf16 %v961_v7, %v959_v6  ;;  %v976_v6 = vld [vmem:[#allocation9 + $0x3b0] sm:$0xff]  ;;  %v150_v2 = vld [vmem:[#allocation4 + $0x1e8] sm:$0xff] }
  0x6f   :  { %245 = vbcast.lane.b32.xlu1 %v239_v15, 264  ;;  %263 = vbcast.lane.b32.xlu0 %v261_v19, 256  ;;  %v940_v15 = vld [vmem:[#allocation9 + $0x290] sm:$0xff] }
  0x70   :  { %v1520_v23 = vpack.c.bf16 %v940_v15, %v938_v14  ;;  %v960_v14 = vld [vmem:[#allocation9 + $0x330] sm:$0xff]  ;;  %v894_v15 = vld [vmem:[#allocation9 + $0x120] sm:$0xff] }
  0x72   :  { %1521 = vmatpush1.bf16.msra.mxu0 %v1520_v23 }
  0x73   :  { %256 = vbcast.lane.b32.xlu1 %v250_v17, 264  ;;  %274 = vbcast.lane.b32.xlu0 %v272_v21, 256  ;;  %v874_v17 = vld [vmem:[#allocation9 + $0x80] sm:$0xff] }
  0x74   :  { %v1456_v24 = vpack.c.bf16 %v876_v18, %v874_v17  ;;  %v896_v17 = vld [vmem:[#allocation9 + $0x130] sm:$0xff]  ;;  %v963_v18 = vld [vmem:[#allocation9 + $0x348] sm:$0xff] }
  0x75   :  { %v1476_v23 = vpack.c.bf16 %v896_v17, %v894_v15  ;;  %v917_v15 = vld [vmem:[#allocation9 + $0x1d8] sm:$0xff] }
  0x76   :  { %1457 = vmatpush1.bf16.msra.mxu1 %v1456_v24 }
  0x77   :  { %267 = vbcast.lane.b32.xlu1 %v261_v19, 264  ;;  %v943_v19 = vld [vmem:[#allocation9 + $0x2a8] sm:$0xff] }
  0x78   :  { %v1522_v25 = vpack.c.bf16 %v945_v20, %v943_v19  ;;  %v965_v19 = vld [vmem:[#allocation9 + $0x358] sm:$0xff]  ;;  %v899_v20 = vld [vmem:[#allocation9 + $0x148] sm:$0xff] }
  0x79   :  { %v1542_v24 = vpack.c.bf16 %v965_v19, %v963_v18  ;;  %v978_v19 = vld [vmem:[#allocation9 + $0x3c0] sm:$0xff] }
  0x7a   :  { %1523 = vmatprep.subr.bf16.mxu0 %v1522_v25  ;;  %v962_v25 = vld [vmem:[#allocation9 + $0x340] sm:$0xff] }
  0x7b   :  { %278 = vbcast.lane.b32.xlu1 %v272_v21, 264  ;;  %v879_v21 = vld [vmem:[#allocation9 + $0xa8] sm:$0xff]  ;;  %1525 = vmatpush1.bf16.msra.mxu0 %v1524_v35  ;;  %v1544_v34 = vpack.c.bf16 %v964_v26, %v962_v25  ;;  %v985_v26 = vld [vmem:[#allocation9 + $0x3f8] sm:$0xff] }
  0x7c   :  { %v1458_v29 = vpack.c.bf16 %v881_v22, %v879_v21  ;;  %1527 = vmatprep.subr.bf16.mxu0 %v1526_v37  ;;  %v901_v21 = vld [vmem:[#allocation9 + $0x158] sm:$0xff]  ;;  %v1540_v22 = vpack.c.bf16 %v960_v14, %v958_v13  ;;  %v1546_v37 = vpack.c.bf16 %v969_v31, %v967_v30  ;;  %v915_v14 = vld [vmem:[#allocation9 + $0x1c8] sm:$0xff] }
  0x7d   :  { %v1478_v28 = vpack.c.bf16 %v901_v21, %v899_v20  ;;  %v981_v13 = vld [vmem:[#allocation9 + $0x3d8] sm:$0xff]  ;;  %v980_v20 = vld [vmem:[#allocation9 + $0x3d0] sm:$0xff]  ;;  %v983_v25 = vld [vmem:[#allocation9 + $0x3e8] sm:$0xff] }
  0x7e   :  { %1459 = vmatprep.subr.bf16.mxu1 %v1458_v29  ;;  %v900_v29 = vld [vmem:[#allocation9 + $0x150] sm:$0xff] }
  0x7f   :  { %1461 = vmatpush1.bf16.msra.mxu1 %v1460_v36  ;;  %1529 = vmatpush1.bf16.msra.mxu0 %v1528_v47  ;;  %v1480_v36 = vpack.c.bf16 %v900_v29, %v898_v27  ;;  %v105_v47 = vld [vmem:[#allocation4 + $0x80] sm:$0xff]  ;;  %v919_v27 = vld [vmem:[#allocation9 + $0x1e8] sm:$0xff]  ;;  %v1560_v29 = vpack.c.bf16 %v980_v20, %v978_v19 }
  0x80   :  { %1463 = vmatprep.subr.bf16.mxu1 %v1462_v41  ;;  %1531 = vmatprep.subr.bf16.mxu0 %v1530_v49  ;;  %v1482_v41 = vpack.c.bf16 %v905_v33, %v903_v32  ;;  %v982_v32 = vld [vmem:[#allocation9 + $0x3e0] sm:$0xff]  ;;  %v984_v33 = vld [vmem:[#allocation9 + $0x3f0] sm:$0xff] }
  0x83   :  { %1465 = vmatpush1.bf16.msra.mxu1 %v1464_v48  ;;  %1533 = vmatpush1.bf16.msra.mxu0 %v1532_v59  ;;  %v1548_v48 = vpack.c.bf16 %v968_v39, %v966_v38  ;;  %v911_v59 = vld [vmem:[#allocation9 + $0x1a8] sm:$0xff]  ;;  %v1564_v38 = vpack.c.bf16 %v984_v33, %v982_v32 }
  0x84   :  { %1467 = vmatprep.subr.bf16.mxu1 %v1466_v53  ;;  %1535 = vmatprep.subr.bf16.mxu0 %v1534_v61  ;;  %v972_v53 = vld [vmem:[#allocation9 + $0x390] sm:$0xff]  ;;  %v111_v61 = vld [vmem:[#allocation4 + $0xb0] sm:$0xff] }
  0x85   :  { %v1552_v62 = vpack.c.bf16 %v972_v53, %v970_v52  ;;  %v123_v39 = vld [vmem:[#allocation4 + $0x110] sm:$0xff] }
  0x87   :  { %1469 = vmatpush1.bf16.msra.mxu1 %v1468_v60  ;;  %1537 = vmatpush1.bf16.msra.mxu0 %v1536_v10  ;;  %v913_v60 = vld [vmem:[#allocation9 + $0x1b8] sm:$0xff]  ;;  %v912_v10 = vld [vmem:[#allocation9 + $0x1b0] sm:$0xff] }
  0x88   :  { %1471 = vmatprep.subr.bf16.mxu1 %v1470_v1  ;;  %1539 = vmatprep.subr.bf16.mxu0 %v1538_v12  ;;  %v1554_v1 = vpack.c.bf16 %v977_v58, %v975_v57  ;;  %v1490_v8 = vpack.c.bf16 %v913_v60, %v911_v59  ;;  %v1492_v18 = vpack.c.bf16 %v912_v10, %v910_v9  ;;  %v99_v57 = vld [vmem:[#allocation4 + $0x50] sm:$0xff]  ;;  %v93_v58 = vld [vmem:[#allocation4 + $0x20] sm:$0xff]  ;;  %v112_v9 = vld [vmem:[#allocation4 + $0xb8] sm:$0xff] }
  0x89   :  { %v102_v10 = vld [vmem:[#allocation4 + $0x68] sm:$0xff] }
  0x8b   :  { %1473 = vmatpush1.bf16.msra.mxu1 %v1472_v11  ;;  %1541 = vmatpush1.bf16.msra.mxu0 %v1540_v22  ;;  %v979_v11 = vld [vmem:[#allocation9 + $0x3c8] sm:$0xff]  ;;  %v1494_v22 = vpack.c.bf16 %v917_v15, %v915_v14  ;;  %v110_v14 = vld [vmem:[#allocation4 + $0xa8] sm:$0xff] }
  0x8c   :  { %1475 = vmatprep.subr.bf16.mxu1 %v1474_v16  ;;  %1543 = vmatprep.subr.bf16.mxu0 %v1542_v24  ;;  %v1556_v16 = vpack.c.bf16 %v976_v6, %v974_v5  ;;  %v1558_v21 = vpack.c.bf16 %v981_v13, %v979_v11  ;;  %v916_v24 = vld [vmem:[#allocation9 + $0x1d0] sm:$0xff]  ;;  %v107_v5 = vld [vmem:[#allocation4 + $0x90] sm:$0xff]  ;;  %v106_v6 = vld [vmem:[#allocation4 + $0x88] sm:$0xff] }
  0x8d   :  { %v108_v11 = vld [vmem:[#allocation4 + $0x98] sm:$0xff] }
  0x8f   :  { %1477 = vmatpush1.bf16.msra.mxu1 %v1476_v23  ;;  %1545 = vmatpush1.bf16.msra.mxu0 %v1544_v34  ;;  %v914_v23 = vld [vmem:[#allocation9 + $0x1c0] sm:$0xff]  ;;  %v1562_v34 = vpack.c.bf16 %v985_v26, %v983_v25 }
  0x90   :  { %1479 = vmatprep.subr.bf16.mxu1 %v1478_v28  ;;  %1547 = vmatprep.subr.bf16.mxu0 %v1546_v37  ;;  %v921_v28 = vld [vmem:[#allocation9 + $0x1f8] sm:$0xff]  ;;  %v1496_v31 = vpack.c.bf16 %v916_v24, %v914_v23  ;;  %v147_v23 = vld [vmem:[#allocation4 + $0x1d0] sm:$0xff] }
  0x91   :  { %v117_v37 = vld [vmem:[#allocation4 + $0xe0] sm:$0xff] }
  0x93   :  { %1481 = vmatpush1.bf16.msra.mxu1 %v1480_v36  ;;  %1549 = vmatpush1.bf16.msra.mxu0 %v1548_v48  ;;  %v1498_v36 = vpack.c.bf16 %v921_v28, %v919_v27  ;;  %v129_v48 = vld [vmem:[#allocation4 + $0x140] sm:$0xff] }
  0x94   :  { %1483 = vmatprep.subr.bf16.mxu1 %v1482_v41  ;;  %1551 = vmatprep.subr.bf16.mxu0 %v1550_v51  ;;  %v141_v28 = vld [vmem:[#allocation4 + $0x1a0] sm:$0xff] }
  0x97   :  { %1485 = vmatpush1.bf16.msra.mxu1 %v1484_v50  ;;  %1553 = vmatpush1.bf16.msra.mxu0 %v1552_v62  ;;  %v135_v50 = vld [vmem:[#allocation4 + $0x170] sm:$0xff] }
  0x98   :  { %1487 = vmatprep.subr.bf16.mxu1 %v1486_v55  ;;  %1555 = vmatprep.subr.bf16.mxu0 %v1554_v1  ;;  %v103_v1 = vld [vmem:[#allocation4 + $0x70] sm:$0xff] }
  0x9b   :  { %1489 = vmatpush1.bf16.msra.mxu1 %v1488_v0  ;;  %1557 = vmatpush1.bf16.msra.mxu0 %v1556_v16  ;;  %v101_v0 = vld [vmem:[#allocation4 + $0x60] sm:$0xff] }
  0x9c   :  { %1491 = vmatprep.subr.bf16.mxu1 %v1490_v8  ;;  %1559 = vmatprep.subr.bf16.mxu0 %v1558_v21  ;;  %v109_v8 = vld [vmem:[#allocation4 + $0xa0] sm:$0xff] }
  0x9f   :  { %1493 = vmatpush1.bf16.msra.mxu1 %v1492_v18  ;;  %1561 = vmatpush1.bf16.msra.mxu0 %v1560_v29 }
  0xa0   :  { %1495 = vmatprep.subr.bf16.mxu1 %v1494_v22  ;;  %1563 = vmatprep.subr.bf16.mxu0 %v1562_v34 }
  0xa3   :  { %1497 = vmatpush1.bf16.msra.mxu1 %v1496_v31  ;;  %1565 = vmatpush1.bf16.msra.mxu0 %v1564_v38 }
  0xa4   :  { %1499 = vmatprep.subr.bf16.mxu1 %v1498_v36 }
  0xc5   :  { %v1920_v35 = vpop.permute.xlu1 %201 }
  0xc6   :  { %v290_v60 = vmul.f32 %v1920_v35, %v99_v57  ;;  %v120_v57 = vld [vmem:[#allocation4 + $0xf8] sm:$0xff] }
  0xc9   :  { %v1922_v49 = vpop.permute.xlu1 %208 }
  0xca   :  { %v296_v63 = vmul.f32 %v1922_v49, %v105_v47  ;;  %v292_v13 = vmul.f32 %v1922_v49, %v101_v0  ;;  %v294_v16 = vmul.f32 %v1922_v49, %v103_v1  ;;  %v297_v18 = vmul.f32 %v1922_v49, %v106_v6  ;;  %v115_v0 = vld [vmem:[#allocation4 + $0xd0] sm:$0xff]  ;;  %v116_v1 = vld [vmem:[#allocation4 + $0xd8] sm:$0xff]  ;;  %v121_v6 = vld [vmem:[#allocation4 + $0x100] sm:$0xff] }
  0xcb   :  { %v293_v21 = vmul.f32 %v1922_v49, %v102_v10 }
  0xcd   :  { %v1925_v7 = vpop.permute.xlu1 %212 }
  0xce   :  { %v302_v12 = vmul.f32 %v1925_v7, %v111_v61  ;;  %v298_v15 = vmul.f32 %v1925_v7, %v107_v5  ;;  %v300_v19 = vmul.f32 %v1925_v7, %v109_v8  ;;  %v303_v20 = vmul.f32 %v1925_v7, %v112_v9 }
  0xcf   :  { %v299_v22 = vmul.f32 %v1925_v7, %v108_v11  ;;  %v301_v25 = vmul.f32 %v1925_v7, %v110_v14  ;;  %v122_v11 = vld [vmem:[#allocation4 + $0x108] sm:$0xff] }
  0xd0   :  { %v1928_v17 = vadd.f32 %v302_v12, %v296_v63  ;;  %v104_v12 = vld [vmem:[#allocation4 + $0x78] sm:$0xff]  ;;  %v418_v26 = vadd.f32 %v298_v15, %v292_v13  ;;  %v432_v29 = vadd.f32 %v300_v19, %v294_v16  ;;  %v453_v31 = vadd.f32 %v303_v20, %v297_v18  ;;  %v118_v18 = vld [vmem:[#allocation4 + $0xe8] sm:$0xff] }
  0xd1   :  { %v1930_v30 = vpop.permute.xlu1 %219  ;;  %v295_v24 = vmul.f32 %v1922_v49, %v104_v12  ;;  %v425_v33 = vadd.f32 %v299_v22, %v293_v21  ;;  %v124_v19 = vld [vmem:[#allocation4 + $0x118] sm:$0xff] }
  0xd2   :  { %v308_v40 = vmul.f32 %v1930_v30, %v117_v37  ;;  %v419_v38 = vrot.slane %v418_v26, 4  ;;  %v447_v49 = vrot.slane %v1928_v17, 4  ;;  %v306_v22 = vmul.f32 %v1930_v30, %v115_v0 }
  0xd3   :  { %v439_v36 = vadd.f32 %v301_v25, %v295_v24  ;;  %v95_v25 = vld [vmem:[#allocation4 + $0x30] sm:$0xff] }
  0xd5   :  { %v1933_v41 = vpop.permute.xlu1 %223 }
  0xd6   :  { %v314_v42 = vmul.f32 %v1933_v41, %v123_v39  ;;  %v433_v39 = vrot.slane %v432_v29, 4  ;;  %v311_v12 = vmul.f32 %v1933_v41, %v120_v57  ;;  %v312_v24 = vmul.f32 %v1933_v41, %v121_v6 }
  0xd8   :  { %v1936_v44 = vadd.f32 %v314_v42, %v308_v40  ;;  %v454_v40 = vrot.slane %v453_v31, 4  ;;  %v426_v42 = vrot.slane %v425_v33, 4 }
  0xd9   :  { %v1938_v47 = vpop.permute.xlu1 %230 }
  0xda   :  { %v831_v45 = vpop.xlane.xlu0 %830  ;;  %v320_v52 = vmul.f32 %v1938_v47, %v129_v48  ;;  %v119_v48 = vld [vmem:[#allocation4 + $0xf0] sm:$0xff] }
  0xdb   :  { %v832_v46 = vadd.f32 %v831_v45, %v827_v43  ;;  %v440_v43 = vrot.slane %v439_v36, 4  ;;  %v420_v45 = vadd.f32 %v419_v38, %v418_v26  ;;  %v310_v8 = vmul.f32 %v1933_v41, %v119_v48  ;;  %v96_v26 = vld [vmem:[#allocation4 + $0x38] sm:$0xff] }
  0xdc   :  { %v315_v38 = vmul.f32 %v1933_v41, %v124_v19  ;;  %v1995_v48 = vmul.f32 %v1920_v35, %v96_v26  ;;  %v489_v19 = vrot.slane %v1936_v44, 4 }
  0xdd   :  { %834 = vst.msk [vmem:[#allocation3] sm:$0xff] %vm87_vm0, %v832_v46  ;;  %v1941_v51 = vpop.permute.xlu1 %234  ;;  %v113_v46 = vld [vmem:[#allocation4 + $0xc0] sm:$0xff]  ;;  %v421_v10 = vrot.slane %v420_v45, 2 }
  0xde   :  { %v326_v53 = vmul.f32 %v1941_v51, %v135_v50  ;;  %v1947_v59 = vpop.permute.xlu0 %197  ;;  %v159_v50 = vld [vmem:[#allocation4 + $0x230] sm:$0xff]  ;;  %v304_v5 = vmul.f32 %v1930_v30, %v113_v46  ;;  %v1992_v46 = vmul.f32 %v1920_v35, %v95_v25 }
  0xdf   :  { %v284_v61 = vmul.f32 %v1947_v59, %v93_v58  ;;  %v427_v58 = vadd.f32 %v426_v42, %v425_v33  ;;  %v97_v33 = vld [vmem:[#allocation4 + $0x40] sm:$0xff] }
  0xe0   :  { %v1945_v56 = vadd.f32 %v326_v53, %v320_v52  ;;  %v434_v52 = vadd.f32 %v433_v39, %v432_v29  ;;  %v448_v53 = vadd.f32 %v447_v49, %v1928_v17  ;;  %v313_v29 = vmul.f32 %v1933_v41, %v122_v11  ;;  %v171_v49 = vld [vmem:[#allocation4 + $0x290] sm:$0xff] }
  0xe1   :  { %v1951_v62 = vadd.f32 %v290_v60, %v284_v61  ;;  %v1963_v27 = vpop.permute.xlu1 %245  ;;  %v153_v61 = vld [vmem:[#allocation4 + $0x200] sm:$0xff]  ;;  %v428_v21 = vrot.slane %v427_v58, 2  ;;  %v2002_v41 = vmul.f32 %v1920_v35, %v97_v33 }
  0xe2   :  { %v338_v32 = vmul.f32 %v1963_v27, %v147_v23  ;;  %v1966_v34 = vpop.permute.xlu0 %241  ;;  %v435_v14 = vrot.slane %v434_v52, 2  ;;  %v449_v15 = vrot.slane %v448_v53, 2  ;;  %v307_v23 = vmul.f32 %v1930_v30, %v116_v1 }
  0xe3   :  { %v332_v37 = vmul.f32 %v1966_v34, %v141_v28 }
  0xe4   :  { %v838_v54 = vld [vmem:[#allocation3] sm:$0xff]  ;;  %v450_v42 = vadd.f32 %v449_v15, %v448_v53  ;;  %v481_v53 = vadd.f32 %v313_v29, %v307_v23  ;;  %v89_v29 = vld [vmem:[#allocation4] sm:$0xff] }
  0xe5   :  { %v839_v55 = vmax.f32 %v838_v54, 1.0  ;;  %v1970_v7 = vadd.f32 %v338_v32, %v332_v37  ;;  %v455_v54 = vadd.f32 %v454_v40, %v453_v31  ;;  %v1973_v60 = vpop.permute.xlu1 %256  ;;  %v460_v31 = vadd.f32 %v310_v8, %v304_v5 }
  0xe6   :  { %v350_v9 = vmul.f32 %v1973_v60, %v159_v50  ;;  %v1980_v13 = vpop.permute.xlu0 %252  ;;  %v309_v37 = vmul.f32 %v1930_v30, %v118_v18  ;;  %v436_v40 = vadd.f32 %v435_v14, %v434_v52  ;;  %v1997_v50 = vadd.f32 %v428_v21, %v427_v58  ;;  %v131_v21 = vld [vmem:[#allocation4 + $0x150] sm:$0xff] }
  0xe7   :  { %1682 = vrcp.f32 %v839_v55  ;;  %v114_v55 = vld [vmem:[#allocation4 + $0xc8] sm:$0xff]  ;;  %v456_v16 = vrot.slane %v455_v54, 2  ;;  %v344_v20 = vmul.f32 %v1980_v13, %v153_v61  ;;  %v100_v61 = vld [vmem:[#allocation4 + $0x58] sm:$0xff]  ;;  %v461_v52 = vrot.slane %v460_v31, 4 }
  0xe8   :  { %v305_v17 = vmul.f32 %v1930_v30, %v114_v55  ;;  %v474_v55 = vadd.f32 %v312_v24, %v306_v22  ;;  %v98_v30 = vld [vmem:[#allocation4 + $0x48] sm:$0xff]  ;;  %v495_v6 = vadd.f32 %v315_v38, %v309_v37  ;;  %v437_v8 = vrot.slane %v436_v40, 1  ;;  %v133_v22 = vld [vmem:[#allocation4 + $0x160] sm:$0xff] }
  0xe9   :  { %v1987_v32 = vadd.f32 %v350_v9, %v344_v20  ;;  %v1999_v57 = vpop.permute.xlu1 %267  ;;  %v451_v9 = vrot.slane %v450_v42, 1  ;;  %v2011_v11 = vmul.f32 %v1920_v35, %v98_v30  ;;  %v482_v18 = vrot.slane %v481_v53, 4  ;;  %v127_v20 = vld [vmem:[#allocation4 + $0x130] sm:$0xff]  ;;  %v920_v30 = vld [vmem:[#allocation9 + $0x1f0] sm:$0xff] }
  0xea   :  { %v467_v39 = vadd.f32 %v311_v12, %v305_v17  ;;  %v2007_v58 = vpop.permute.xlu0 %263  ;;  %v2014_v12 = vmul.f32 %v1920_v35, %v100_v61  ;;  %v475_v15 = vrot.slane %v474_v55, 4  ;;  %v496_v35 = vrot.slane %v495_v6, 4 }
  0xeb   :  { %v2023_v33 = vadd.f32 %v437_v8, %v436_v40  ;;  %v2025_v37 = vadd.f32 %v451_v9, %v450_v42  ;;  %v324_v40 = vmul.f32 %v1941_v51, %v133_v22  ;;  %v483_v42 = vadd.f32 %v482_v18, %v481_v53  ;;  %v90_v8 = vld [vmem:[#allocation4 + $0x8] sm:$0xff]  ;;  %v132_v18 = vld [vmem:[#allocation4 + $0x158] sm:$0xff] }
  0xec   :  { %v468_v5 = vrot.slane %v467_v39, 4  ;;  %v476_v61 = vadd.f32 %v475_v15, %v474_v55  ;;  %v280_v9 = vmul.f32 %v1947_v59, %v89_v29  ;;  %v281_v29 = vmul.f32 %v1947_v59, %v90_v8 }
  0xed   :  { %v615_v14 = vrot.slane %v1987_v32, 4 }
  0xee   :  { %v469_v26 = vadd.f32 %v468_v5, %v467_v39  ;;  %v136_v39 = vld [vmem:[#allocation4 + $0x178] sm:$0xff]  ;;  %v477_v53 = vrot.slane %v476_v61, 2 }
  0xef   :  { %v327_v22 = vmul.f32 %v1941_v51, %v136_v39  ;;  %v323_v39 = vmul.f32 %v1941_v51, %v132_v18 }
  0xf1   :  { %v1683_v63 = vpop.eup %1682 }
  0xf2   :  { %849 = vperm.xlu0 %1681, %v1683_v63   ;;  %v441_v63 = vadd.f32 %v440_v43, %v439_v36  ;;  %v422_v36 = vadd.f32 %v421_v10, %v420_v45  ;;  %v457_v43 = vadd.f32 %v456_v16, %v455_v54  ;;  %v165_v45 = vld [vmem:[#allocation4 + $0x260] sm:$0xff]  ;;  %v362_v54 = vmul.f32 %v1999_v57, %v171_v49  ;;  %v91_v49 = vld [vmem:[#allocation4 + $0x10] sm:$0xff] }
  0xf3   :  { %v356_v17 = vmul.f32 %v2007_v58, %v165_v45  ;;  %v462_v16 = vadd.f32 %v461_v52, %v460_v31  ;;  %v918_v45 = vld [vmem:[#allocation9 + $0x1e0] sm:$0xff]  ;;  %v282_v55 = vmul.f32 %v1947_v59, %v91_v49 }
  0xf4   :  { %v442_v28 = vrot.slane %v441_v63, 2  ;;  %v423_v0 = vrot.slane %v422_v36, 1  ;;  %v458_v10 = vrot.slane %v457_v43, 1  ;;  %v130_v52 = vld [vmem:[#allocation4 + $0x148] sm:$0xff]  ;;  %v1500_v15 = vpack.c.bf16 %v920_v30, %v918_v45 }
  0xf5   :  { %v2018_v23 = vadd.f32 %v362_v54, %v356_v17  ;;  %v318_v54 = vmul.f32 %v1938_v47, %v127_v20  ;;  %v463_v5 = vrot.slane %v462_v16, 2  ;;  %v497_v17 = vadd.f32 %v496_v35, %v495_v6  ;;  %v94_v49 = vld [vmem:[#allocation4 + $0x28] sm:$0xff] }
  0xf6   :  { %v2005_v1 = vadd.f32 %v442_v28, %v441_v63  ;;  %v125_v63 = vld [vmem:[#allocation4 + $0x120] sm:$0xff]  ;;  %v2020_v24 = vadd.f32 %v423_v0, %v422_v36  ;;  %v126_v28 = vld [vmem:[#allocation4 + $0x128] sm:$0xff]  ;;  %v2027_v31 = vadd.f32 %v458_v10, %v457_v43  ;;  %v128_v36 = vld [vmem:[#allocation4 + $0x138] sm:$0xff]  ;;  %v322_v0 = vmul.f32 %v1941_v51, %v131_v21  ;;  %1501 = vmatpush1.bf16.msra.mxu1 %v1500_v15 }
  0xf7   :  { %v316_v38 = vmul.f32 %v1938_v47, %v125_v63  ;;  %v490_v43 = vadd.f32 %v489_v19, %v1936_v44  ;;  %v470_v10 = vrot.slane %v469_v26, 2  ;;  %v92_v63 = vld [vmem:[#allocation4 + $0x18] sm:$0xff]  ;;  %v317_v20 = vmul.f32 %v1938_v47, %v126_v28  ;;  %v134_v44 = vld [vmem:[#allocation4 + $0x168] sm:$0xff] }
  0xf8   :  { %2352 = vst [vmem:[#allocation18_spill] sm:$0xff] %v2027_v31  ;;  %v319_v4 = vmul.f32 %v1938_v47, %v128_v36  ;;  %v321_v21 = vmul.f32 %v1938_v47, %v130_v52  ;;  %v516_v3 = vadd.f32 %v324_v40, %v318_v54  ;;  %v484_v6 = vrot.slane %v483_v42, 2 }
  0xf9   :  { %v502_v19 = vadd.f32 %v322_v0, %v316_v38  ;;  %v491_v35 = vrot.slane %v490_v43, 2  ;;  %v283_v45 = vmul.f32 %v1947_v59, %v92_v63  ;;  %v376_v28 = vadd.f32 %v1992_v46, %v280_v9 }
  0xfa   :  { %v464_v30 = vadd.f32 %v463_v5, %v462_v16  ;;  %v2043_v36 = vadd.f32 %v470_v10, %v469_v26  ;;  %v498_v47 = vrot.slane %v497_v17, 2  ;;  %v390_v52 = vadd.f32 %v2002_v41, %v282_v55 }
  0xfb   :  { %v325_v38 = vmul.f32 %v1941_v51, %v134_v44  ;;  %v531_v54 = vrot.slane %v1945_v56, 4  ;;  %v537_v0 = vadd.f32 %v327_v22, %v321_v21  ;;  %v503_v40 = vrot.slane %v502_v19, 4 }
  0xfc   :  { %v517_v8 = vrot.slane %v516_v3, 4  ;;  %v285_v15 = vmul.f32 %v1947_v59, %v94_v49  ;;  %v383_v63 = vadd.f32 %v1995_v48, %v281_v29  ;;  %v478_v46 = vadd.f32 %v477_v53, %v476_v61  ;;  %v987_v49 = vld [vmem:[#allocation9 + $0x408] sm:$0xff] }
  0xfd   :  { %v492_v16 = vadd.f32 %v491_v35, %v490_v43  ;;  %v377_v26 = vrot.slane %v376_v28, 4  ;;  %v397_v5 = vadd.f32 %v2011_v11, %v283_v45  ;;  %v465_v9 = vrot.slane %v464_v30, 1 }
  0xfe   :  { %v2052_v41 = vadd.f32 %v484_v6, %v483_v42  ;;  %v499_v10 = vadd.f32 %v498_v47, %v497_v17  ;;  %v391_v55 = vrot.slane %v390_v52, 4  ;;  %v509_v51 = vadd.f32 %v323_v39, %v317_v20 }
  0xff   :  { %v523_v18 = vadd.f32 %v325_v38, %v319_v4  ;;  %v532_v21 = vadd.f32 %v531_v54, %v1945_v56  ;;  %v538_v22 = vrot.slane %v537_v0, 4  ;;  %v504_v44 = vadd.f32 %v503_v40, %v502_v19  ;;  %v989_v19 = vld [vmem:[#allocation9 + $0x418] sm:$0xff] }
 0x100   :  { %v518_v25 = vadd.f32 %v517_v8, %v516_v3  ;;  %v384_v59 = vrot.slane %v383_v63, 4  ;;  %v411_v48 = vadd.f32 %v2014_v12, %v285_v15  ;;  %v479_v61 = vrot.slane %v478_v46, 1  ;;  %v143_v8 = vld [vmem:[#allocation4 + $0x1b0] sm:$0xff]  ;;  %v145_v15 = vld [vmem:[#allocation4 + $0x1c0] sm:$0xff] }
 0x101   :  { %v493_v43 = vrot.slane %v492_v16, 1  ;;  %v378_v53 = vadd.f32 %v377_v26, %v376_v28  ;;  %v398_v29 = vrot.slane %v397_v5, 4  ;;  %v2056_v11 = vadd.f32 %v465_v9, %v464_v30 }
 0x102   :  { %v500_v42 = vrot.slane %v499_v10, 1  ;;  %v392_v6 = vadd.f32 %v391_v55, %v390_v52  ;;  %v405_v17 = vrot.slane %v1951_v62, 4  ;;  %v510_v20 = vrot.slane %v509_v51, 4 }
 0x103   :  { %2353 = vst [vmem:[#allocation19_spill] sm:$0xff] %v2056_v11  ;;  %v524_v4 = vrot.slane %v523_v18, 4  ;;  %v533_v35 = vrot.slane %v532_v21, 2  ;;  %v539_v56 = vadd.f32 %v538_v22, %v537_v0  ;;  %v505_v3 = vrot.slane %v504_v44, 2  ;;  %v139_v22 = vld [vmem:[#allocation4 + $0x190] sm:$0xff] }
 0x104   :  { %v519_v45 = vrot.slane %v518_v25, 2  ;;  %v385_v47 = vadd.f32 %v384_v59, %v383_v63  ;;  %v412_v12 = vrot.slane %v411_v48, 4  ;;  %v2059_v39 = vadd.f32 %v479_v61, %v478_v46  ;;  %v137_v46 = vld [vmem:[#allocation4 + $0x180] sm:$0xff]  ;;  %v148_v61 = vld [vmem:[#allocation4 + $0x1d8] sm:$0xff] }
 0x105   :  { %v2061_v28 = vadd.f32 %v493_v43, %v492_v16  ;;  %v379_v30 = vrot.slane %v378_v53, 2  ;;  %v399_v38 = vadd.f32 %v398_v29, %v397_v5  ;;  %v2063_v54 = vadd.f32 %v500_v42, %v499_v10  ;;  %v142_v43 = vld [vmem:[#allocation4 + $0x1a8] sm:$0xff] }
 0x106   :  { %2354 = vst [vmem:[#allocation20_spill] sm:$0xff] %v2059_v39  ;;  %v393_v52 = vrot.slane %v392_v6, 2  ;;  %v406_v40 = vadd.f32 %v405_v17, %v1951_v62  ;;  %v1566_v0 = vpack.c.bf16 %v989_v19, %v987_v49  ;;  %v2066_v26 = vadd.f32 %v510_v20, %v509_v51  ;;  %v152_v39 = vld [vmem:[#allocation4 + $0x1f8] sm:$0xff] }
 0x107   :  { %2355 = vst [vmem:[#allocation21_spill] sm:$0xff] %v2063_v54  ;;  %v2068_v9 = vadd.f32 %v524_v4, %v523_v18  ;;  %v534_v63 = vadd.f32 %v533_v35, %v532_v21  ;;  %v540_v55 = vrot.slane %v539_v56, 2  ;;  %v2070_v16 = vadd.f32 %v505_v3, %v504_v44  ;;  %v149_v3 = vld [vmem:[#allocation4 + $0x1e0] sm:$0xff] }
 0x108   :  { %v2072_v59 = vadd.f32 %v519_v45, %v518_v25  ;;  %v386_v5 = vrot.slane %v385_v47, 2  ;;  %v413_v10 = vadd.f32 %v412_v12, %v411_v48  ;;  %1567 = vmatprep.subr.bf16.mxu0 %v1566_v0  ;;  %v380_v62 = vadd.f32 %v379_v30, %v378_v53  ;;  %v146_v30 = vld [vmem:[#allocation4 + $0x1c8] sm:$0xff]  ;;  %v140_v0 = vld [vmem:[#allocation4 + $0x198] sm:$0xff] }
 0x109   :  { %v400_v29 = vrot.slane %v399_v38, 2  ;;  %v334_v51 = vmul.f32 %v1963_v27, %v143_v8  ;;  %v336_v18 = vmul.f32 %v1963_v27, %v145_v15  ;;  %v394_v42 = vadd.f32 %v393_v52, %v392_v6  ;;  %v138_v15 = vld [vmem:[#allocation4 + $0x188] sm:$0xff] }
 0x10a   :  { %2356 = vst [vmem:[#allocation22_spill] sm:$0xff] %v2072_v59  ;;  %v407_v21 = vrot.slane %v406_v40, 2  ;;  %v328_v17 = vmul.f32 %v1966_v34, %v137_v46  ;;  %v330_v44 = vmul.f32 %v1966_v34, %v139_v22  ;;  %v535_v20 = vrot.slane %v534_v63, 1 }
 0x10b   :  { %v2078_v25 = vadd.f32 %v540_v55, %v539_v56  ;;  %v339_v48 = vmul.f32 %v1963_v27, %v148_v61  ;;  %v333_v4 = vmul.f32 %v1966_v34, %v142_v43  ;;  %v2084_v49 = vadd.f32 %v386_v5, %v385_v47  ;;  %v144_v56 = vld [vmem:[#allocation4 + $0x1b8] sm:$0xff] }
 0x10c   :  { %v414_v19 = vrot.slane %v413_v10, 2  ;;  %v381_v45 = vrot.slane %v380_v62, 1  ;;  %v2088_v12 = vadd.f32 %v400_v29, %v399_v38  ;;  %v395_v52 = vrot.slane %v394_v42, 1  ;;  %v156_v47 = vld [vmem:[#allocation4 + $0x218] sm:$0xff] }
 0x10d   :  { %2357 = vst [vmem:[#allocation23_spill] sm:$0xff] %v2078_v25  ;;  %v2090_v8 = vadd.f32 %v407_v21, %v406_v40  ;;  %v544_v55 = vadd.f32 %v334_v51, %v328_v17  ;;  %v558_v46 = vadd.f32 %v336_v18, %v330_v44  ;;  %v2092_v22 = vadd.f32 %v535_v20, %v534_v63  ;;  %v155_v21 = vld [vmem:[#allocation4 + $0x210] sm:$0xff]  ;;  %v157_v17 = vld [vmem:[#allocation4 + $0x220] sm:$0xff]  ;;  %v158_v25 = vld [vmem:[#allocation4 + $0x228] sm:$0xff] }
 0x10e   :  { %v573_v5 = vrot.slane %v1970_v7, 4  ;;  %v579_v61 = vadd.f32 %v339_v48, %v333_v4  ;;  %v2097_v38 = vadd.f32 %v414_v19, %v413_v10  ;;  %v335_v29 = vmul.f32 %v1963_v27, %v144_v56  ;;  %v151_v44 = vld [vmem:[#allocation4 + $0x1f0] sm:$0xff]  ;;  %v2109_v19 = vpop.permute.xlu1 %278  ;;  %v2111_v56 = vpop.permute.xlu0 %274 }
 0x10f   :  { %v337_v40 = vmul.f32 %v1963_v27, %v146_v30  ;;  %v2101_v6 = vadd.f32 %v381_v45, %v380_v62  ;;  %v329_v51 = vmul.f32 %v1966_v34, %v138_v15  ;;  %v331_v18 = vmul.f32 %v1966_v34, %v140_v0  ;;  %v183_v27 = vld [vmem:[#allocation4 + $0x2f0] sm:$0xff]  ;;  %v177_v62 = vld [vmem:[#allocation4 + $0x2c0] sm:$0xff]  ;;  %v160_v15 = vld [vmem:[#allocation4 + $0x238] sm:$0xff] }
 0x110   :  { %v2106_v20 = vadd.f32 %v395_v52, %v394_v42  ;;  %v409_v10 = vrot.slane %v2090_v8, 1  ;;  %v545_v48 = vrot.slane %v544_v55, 4  ;;  %v559_v4 = vrot.slane %v558_v46, 4  ;;  %v154_v0 = vld [vmem:[#allocation4 + $0x208] sm:$0xff] }
 0x111   :  { %v574_v45 = vadd.f32 %v573_v5, %v1970_v7  ;;  %v580_v30 = vrot.slane %v579_v61, 4  ;;  %v346_v34 = vmul.f32 %v1973_v60, %v155_v21  ;;  %v340_v42 = vmul.f32 %v1980_v13, %v149_v3 }
 0x112   :  { %v416_v52 = vrot.slane %v2097_v38, 1  ;;  %v348_v63 = vmul.f32 %v1973_v60, %v157_v17  ;;  %v342_v35 = vmul.f32 %v1980_v13, %v151_v44  ;;  %v551_v43 = vadd.f32 %v335_v29, %v329_v51 }
 0x113   :  { %v565_v53 = vadd.f32 %v337_v40, %v331_v18  ;;  %v374_v7 = vmul.f32 %v2109_v19, %v183_v27  ;;  %v368_v5 = vmul.f32 %v2111_v56, %v177_v62  ;;  %v546_v21 = vadd.f32 %v545_v48, %v544_v55 }
 0x114   :  { %v560_v54 = vadd.f32 %v559_v4, %v558_v46  ;;  %v351_v3 = vmul.f32 %v1973_v60, %v160_v15  ;;  %v345_v31 = vmul.f32 %v1980_v13, %v154_v0  ;;  %v575_v17 = vrot.slane %v574_v45, 2 }
 0x115   :  { %v581_v59 = vadd.f32 %v580_v30, %v579_v61  ;;  %v347_v44 = vmul.f32 %v1973_v60, %v156_v47  ;;  %v586_v11 = vadd.f32 %v346_v34, %v340_v42  ;;  %v341_v29 = vmul.f32 %v1980_v13, %v150_v2  ;;  %v167_v34 = vld [vmem:[#allocation4 + $0x270] sm:$0xff]  ;;  %v168_v42 = vld [vmem:[#allocation4 + $0x278] sm:$0xff] }
 0x116   :  { %v600_v40 = vadd.f32 %v348_v63, %v342_v35  ;;  %v616_v51 = vadd.f32 %v615_v14, %v1987_v32  ;;  %v657_v18 = vrot.slane %v2018_v23, 4  ;;  %v552_v55 = vrot.slane %v551_v43, 4 }
 0x117   :  { %v349_v46 = vmul.f32 %v1973_v60, %v158_v25  ;;  %v343_v48 = vmul.f32 %v1980_v13, %v152_v39  ;;  %v698_v4 = vadd.f32 %v374_v7, %v368_v5  ;;  %v547_v27 = vrot.slane %v546_v21, 2  ;;  %v162_v7 = vld [vmem:[#allocation4 + $0x248] sm:$0xff] }
 0x118   :  { %v561_v62 = vrot.slane %v560_v54, 2  ;;  %v566_v15 = vrot.slane %v565_v53, 4  ;;  %v621_v61 = vadd.f32 %v351_v3, %v345_v31  ;;  %v410_v47 = vadd.f32 %v409_v10, %v2090_v8  ;;  %v172_v3 = vld [vmem:[#allocation4 + $0x298] sm:$0xff] }
 0x119   :  { %v576_v30 = vadd.f32 %v575_v17, %v574_v45  ;;  %v582_v2 = vrot.slane %v581_v59, 2  ;;  %v587_v35 = vrot.slane %v586_v11, 4  ;;  %v593_v32 = vadd.f32 %v347_v44, %v341_v29  ;;  %v161_v44 = vld [vmem:[#allocation4 + $0x240] sm:$0xff] }
 0x11a   :  { %v601_v14 = vrot.slane %v600_v40, 4  ;;  %v617_v63 = vrot.slane %v616_v51, 2  ;;  %v658_v60 = vadd.f32 %v657_v18, %v2018_v23  ;;  %v2133_v13 = vadd.f32 %v416_v52, %v2097_v38  ;;  %v170_v52 = vld [vmem:[#allocation4 + $0x288] sm:$0xff]  ;;  %v180_v18 = vld [vmem:[#allocation4 + $0x2d8] sm:$0xff] }
 0x11b   :  { %v2135_v39 = vadd.f32 %v552_v55, %v551_v43  ;;  %v2137_v31 = vadd.f32 %v349_v46, %v343_v48  ;;  %v699_v25 = vrot.slane %v698_v4, 4  ;;  %v2139_v8 = vadd.f32 %v547_v27, %v546_v21  ;;  %v169_v43 = vld [vmem:[#allocation4 + $0x280] sm:$0xff]  ;;  %v174_v55 = vld [vmem:[#allocation4 + $0x2a8] sm:$0xff] }
 0x11c   :  { %v2141_v10 = vadd.f32 %v561_v62, %v560_v54  ;;  %v2143_v45 = vadd.f32 %v566_v15, %v565_v53  ;;  %v622_v0 = vrot.slane %v621_v61, 4  ;;  %v577_v23 = vrot.slane %v576_v30, 1 }
 0x11d   :  { %v2145_v5 = vadd.f32 %v582_v2, %v581_v59  ;;  %v2147_v38 = vadd.f32 %v587_v35, %v586_v11  ;;  %v358_v17 = vmul.f32 %v1999_v57, %v167_v34  ;;  %v594_v21 = vrot.slane %v593_v32, 4 }
 0x11e   :  { %v2150_v54 = vadd.f32 %v601_v14, %v600_v40  ;;  %v618_v53 = vadd.f32 %v617_v63, %v616_v51  ;;  %v659_v29 = vrot.slane %v658_v60, 2  ;;  %v608_v46 = vrot.slane %v2137_v31, 4  ;;  %v163_v51 = vld [vmem:[#allocation4 + $0x250] sm:$0xff] }
 0x11f   :  { %v359_v59 = vmul.f32 %v1999_v57, %v168_v42  ;;  %v353_v11 = vmul.f32 %v2007_v58, %v162_v7  ;;  %v700_v48 = vadd.f32 %v699_v25, %v698_v4  ;;  %v2155_v27 = vadd.f32 %v622_v0, %v621_v61  ;;  %v164_v0 = vld [vmem:[#allocation4 + $0x258] sm:$0xff] }
 0x120   :  { %v360_v62 = vmul.f32 %v1999_v57, %v169_v43  ;;  %v2159_v15 = vmul.f32 %v1999_v57, %v170_v52  ;;  %v2162_v40 = vmul.f32 %v1999_v57, %v172_v3  ;;  %v589_v2 = vrot.slane %v2147_v38, 2 }
 0x121   :  { %v352_v35 = vmul.f32 %v2007_v58, %v161_v44  ;;  %v371_v14 = vmul.f32 %v2109_v19, %v180_v18  ;;  %v365_v4 = vmul.f32 %v2111_v56, %v174_v55  ;;  %v578_v63 = vadd.f32 %v577_v23, %v576_v30 }
 0x122   :  { %v619_v34 = vrot.slane %v618_v53, 1  ;;  %v660_v25 = vadd.f32 %v659_v29, %v658_v60  ;;  %v354_v42 = vmul.f32 %v2007_v58, %v163_v51  ;;  %v635_v57 = vadd.f32 %v359_v59, %v353_v11 }
 0x123   :  { %v701_v7 = vrot.slane %v700_v48, 2  ;;  %v795_v43 = vsel %vm760_vm2, %v2025_v37, %v410_v47  ;;  %v595_v52 = vadd.f32 %v594_v21, %v593_v32  ;;  %v554_v55 = vrot.slane %v2135_v39, 2  ;;  %v166_v32 = vld [vmem:[#allocation4 + $0x268] sm:$0xff] }
 0x124   :  { %v620_v3 = vadd.f32 %v619_v34, %v618_v53  ;;  %v661_v44 = vrot.slane %v660_v25, 1  ;;  %v796_v18 = vsel %vm762_vm3, %v2061_v28, %v795_v43  ;;  %v677_v61 = vadd.f32 %v371_v14, %v365_v4  ;;  %v182_v21 = vld [vmem:[#allocation4 + $0x2e8] sm:$0xff]  ;;  %v176_v53 = vld [vmem:[#allocation4 + $0x2b8] sm:$0xff] }
 0x125   :  { %v702_v30 = vadd.f32 %v701_v7, %v700_v48  ;;  %v797_v60 = vsel %vm764_vm4, %v2092_v22, %v796_v18  ;;  %v355_v23 = vmul.f32 %v2007_v58, %v164_v0  ;;  %v2358_v29 = vrot.slane %v2066_v26, 2  ;;  %v179_v0 = vld [vmem:[#allocation4 + $0x2d0] sm:$0xff]  ;;  %v181_v18 = vld [vmem:[#allocation4 + $0x2e0] sm:$0xff] }
 0x126   :  { %v662_v37 = vadd.f32 %v661_v44, %v660_v25  ;;  %v798_v47 = vsel %vm766_vm5, %v578_v63, %v797_v60  ;;  %v472_v28 = vrot.slane %v2043_v36, 1  ;;  %v636_v11 = vrot.slane %v635_v57, 4 }
 0x127   :  { %v513_v59 = vadd.f32 %v2358_v29, %v2066_v26  ;;  %v703_v51 = vrot.slane %v702_v30, 1  ;;  %v799_v48 = vsel %vm768_vm6, %v620_v3, %v798_v47  ;;  %v2359_v22 = vrot.slane %v2084_v49, 1 }
 0x128   :  { %v2360_v4 = vrot.slane %v1997_v50, 1  ;;  %v596_v34 = vrot.slane %v595_v52, 2  ;;  %v800_v63 = vsel %vm770_vm7, %v662_v37, %v799_v48  ;;  %v2191_v25 = vadd.f32 %v358_v17, %v352_v35  ;;  %v173_v35 = vld [vmem:[#allocation4 + $0x2a0] sm:$0xff] }
 0x129   :  { %v389_v14 = vadd.f32 %v2359_v22, %v2084_v49  ;;  %v555_v7 = vadd.f32 %v554_v55, %v2135_v39  ;;  %v678_v43 = vrot.slane %v677_v61, 4  ;;  %v704_v44 = vadd.f32 %v703_v51, %v702_v30  ;;  %v178_v22 = vld [vmem:[#allocation4 + $0x2c8] sm:$0xff] }
 0x12a   :  { %v431_v26 = vadd.f32 %v2360_v4, %v1997_v50  ;;  %v357_v3 = vmul.f32 %v2007_v58, %v166_v32  ;;  %v373_v60 = vmul.f32 %v2109_v19, %v182_v21  ;;  %v367_v49 = vmul.f32 %v2111_v56, %v176_v53 }
 0x12b   :  { %v514_v29 = vrot.slane %v513_v59, 1  ;;  %v2197_v47 = vadd.f32 %v360_v62, %v354_v42  ;;  %v473_v50 = vadd.f32 %v472_v28, %v2043_v36  ;;  %v637_v37 = vadd.f32 %v636_v11, %v635_v57  ;;  %v175_v42 = vld [vmem:[#allocation4 + $0x2b0] sm:$0xff] }
 0x12c   :  { %v2201_v17 = vsel %vm772_vm8, %v704_v44, %v800_v63  ;;  %v370_v39 = vmul.f32 %v2109_v19, %v179_v0  ;;  %v597_v55 = vadd.f32 %v596_v34, %v595_v52  ;;  %v774_v58 = vsel %vm760_vm2, %v431_v26, %v389_v14 }
 0x12d   :  { %v609_v30 = vadd.f32 %v608_v46, %v2137_v31  ;;  %v629_v32 = vrot.slane %v2191_v25, 4  ;;  %v372_v62 = vmul.f32 %v2109_v19, %v181_v18  ;;  %v556_v36 = vrot.slane %v555_v7, 1  ;;  %v184_v46 = vld [vmem:[#allocation4 + $0x2f8] sm:$0xff] }
 0x12e   :  { %v679_v57 = vadd.f32 %v678_v43, %v677_v61  ;;  %v663_v21 = vadd.f32 %v2162_v40, %v357_v3  ;;  %v515_v53 = vadd.f32 %v514_v29, %v513_v59  ;;  %v649_v28 = vadd.f32 %v2159_v15, %v355_v23 }
 0x12f   :  { %v691_v11 = vadd.f32 %v373_v60, %v367_v49  ;;  %v364_v52 = vmul.f32 %v2111_v56, %v173_v35  ;;  %v638_v51 = vrot.slane %v637_v37, 2  ;;  %v775_v48 = vsel %vm762_vm3, %v473_v50, %v774_v58 }
 0x130   :  { %v568_v31 = vrot.slane %v2143_v45, 2  ;;  %v366_v14 = vmul.f32 %v2111_v56, %v175_v42  ;;  %v598_v4 = vrot.slane %v597_v55, 1  ;;  %v2361_v61 = vrot.slane %v2068_v9, 2 }
 0x131   :  { %v610_v59 = vrot.slane %v609_v30, 2  ;;  %v557_v26 = vadd.f32 %v556_v36, %v555_v7  ;;  %v680_v15 = vrot.slane %v679_v57, 2  ;;  %v2362_v23 = vrot.slane %v2088_v12, 1 }
 0x132   :  { %v527_v40 = vadd.f32 %v2361_v61, %v2068_v9  ;;  %v486_v63 = vrot.slane %v2052_v41, 1  ;;  %v776_v0 = vsel %vm764_vm4, %v515_v53, %v775_v48  ;;  %v2363_v43 = vrot.slane %v2005_v1, 1 }
 0x133   :  { %v403_v34 = vadd.f32 %v2362_v23, %v2088_v12  ;;  %v650_v3 = vrot.slane %v649_v28, 4  ;;  %v692_v18 = vrot.slane %v691_v11, 4  ;;  %v375_v60 = vmul.f32 %v2109_v19, %v184_v46 }
 0x134   :  { %v445_v44 = vadd.f32 %v2363_v43, %v2005_v1  ;;  %v369_v9 = vmul.f32 %v2111_v56, %v178_v22  ;;  %v639_v7 = vadd.f32 %v638_v51, %v637_v37  ;;  %v569_v49 = vadd.f32 %v568_v31, %v2143_v45 }
 0x135   :  { %v670_v29 = vadd.f32 %v370_v39, %v364_v52  ;;  %v599_v50 = vadd.f32 %v598_v4, %v597_v55  ;;  %v528_v12 = vrot.slane %v527_v40, 1  ;;  %v611_v35 = vadd.f32 %v610_v59, %v609_v30 }
 0x136   :  { %v684_v58 = vadd.f32 %v372_v62, %v366_v14  ;;  %v2230_v42 = vadd.f32 %v680_v15, %v679_v57  ;;  %v777_v36 = vsel %vm766_vm5, %v557_v26, %v776_v0  ;;  %v487_v1 = vadd.f32 %v486_v63, %v2052_v41 }
 0x137   :  { %v643_v53 = vrot.slane %v2197_v47, 4  ;;  %v651_v48 = vadd.f32 %v650_v3, %v649_v28  ;;  %v693_v19 = vadd.f32 %v692_v18, %v691_v11  ;;  %v788_v56 = vsel %vm760_vm2, %v445_v44, %v403_v34 }
 0x138   :  { %v624_v37 = vrot.slane %v2155_v27, 2  ;;  %v705_v45 = vadd.f32 %v375_v60, %v369_v9  ;;  %v640_v39 = vrot.slane %v639_v7, 1  ;;  %v570_v55 = vrot.slane %v569_v49, 1  ;;  %v2366_v9 = vld [vmem:[#allocation19_spill] sm:$0xff] }
 0x139   :  { %v664_v52 = vrot.slane %v663_v21, 4  ;;  %v2238_v30 = vsel %vm768_vm6, %v599_v50, %v777_v36  ;;  %v529_v62 = vadd.f32 %v528_v12, %v527_v40  ;;  %v612_v57 = vrot.slane %v611_v35, 1  ;;  %v2370_v36 = vld [vmem:[#allocation20_spill] sm:$0xff] }
 0x13a   :  { %v682_v51 = vrot.slane %v2230_v42, 1  ;;  %v789_v41 = vsel %vm762_vm3, %v487_v1, %v788_v56  ;;  %v671_v31 = vrot.slane %v670_v29, 4  ;;  %v685_v28 = vrot.slane %v684_v58, 4  ;;  %v2371_v56 = vld [vmem:[#allocation23_spill] sm:$0xff] }
 0x13b   :  { %v652_v11 = vrot.slane %v651_v48, 2  ;;  %v694_v46 = vrot.slane %v693_v19, 2  ;;  %v630_v22 = vadd.f32 %v629_v32, %v2191_v25  ;;  %v644_v14 = vadd.f32 %v643_v53, %v2197_v47 }
 0x13c   :  { %v2244_v4 = vadd.f32 %v640_v39, %v639_v7  ;;  %v571_v61 = vadd.f32 %v570_v55, %v569_v49  ;;  %v549_v59 = vrot.slane %v2139_v8, 1  ;;  %v706_v26 = vrot.slane %v705_v45, 4 }
 0x13d   :  { %v613_v40 = vadd.f32 %v612_v57, %v611_v35  ;;  %v790_v15 = vsel %vm764_vm4, %v529_v62, %v789_v41  ;;  %v2364_v23 = vrot.slane %v2070_v16, 1  ;;  %v665_v63 = vadd.f32 %v664_v52, %v663_v21 }
 0x13e   :  { %v590_v25 = vadd.f32 %v589_v2, %v2147_v38  ;;  %v672_v32 = vadd.f32 %v671_v31, %v670_v29  ;;  %v761_v47 = vsel %vm760_vm2, %v2020_v24, %v2101_v6  ;;  %v686_v0 = vadd.f32 %v685_v28, %v684_v58  ;;  %v2367_v24 = vld [vmem:[#allocation22_spill] sm:$0xff] }
 0x13f   :  { %v508_v34 = vadd.f32 %v2364_v23, %v2070_v16  ;;  %v653_v43 = vadd.f32 %v652_v11, %v651_v48  ;;  %v695_v44 = vadd.f32 %v694_v46, %v693_v19  ;;  %v631_v3 = vrot.slane %v630_v22, 2 }
 0x140   :  { %v645_v18 = vrot.slane %v644_v14, 2  ;;  %v550_v60 = vadd.f32 %v549_v59, %v2139_v8  ;;  %v2365_v16 = vrot.slane %v2150_v54, 2  ;;  %v781_v38 = vsel %vm760_vm2, %v2023_v33, %v2106_v20 }
 0x141   :  { %v707_v2 = vadd.f32 %v706_v26, %v705_v45  ;;  %v763_v7 = vsel %vm762_vm3, %v2366_v9, %v761_v47  ;;  %v2368_v6 = vrot.slane %v2367_v24, 1  ;;  %v563_v29 = vrot.slane %v2141_v10, 1 }
 0x142   :  { %v604_v21 = vadd.f32 %v2365_v16, %v2150_v54  ;;  %v666_v50 = vrot.slane %v665_v63, 2  ;;  %v673_v8 = vrot.slane %v672_v32, 2  ;;  %v687_v12 = vrot.slane %v686_v0, 2  ;;  %v2369_v54 = vld [vmem:[#allocation18_spill] sm:$0xff] }
 0x143   :  { %v522_v49 = vadd.f32 %v2368_v6, %v2367_v24  ;;  %v625_v35 = vadd.f32 %v624_v37, %v2155_v27  ;;  %v802_v58 = vsel %vm760_vm2, %v2369_v54, %v2133_v13  ;;  %v632_v33 = vadd.f32 %v631_v3, %v630_v22  ;;  %v2373_v13 = vld [vmem:[#allocation21_spill] sm:$0xff] }
 0x144   :  { %v646_v20 = vadd.f32 %v645_v18, %v644_v14  ;;  %v782_v1 = vsel %vm762_vm3, %v2370_v36, %v781_v38  ;;  %v584_v53 = vrot.slane %v2145_v5, 1  ;;  %v591_v48 = vrot.slane %v590_v25, 1 }
 0x145   :  { %v605_v19 = vrot.slane %v604_v21, 1  ;;  %v2372_v45 = vrot.slane %v2371_v56, 1  ;;  %v708_v55 = vrot.slane %v707_v2, 2  ;;  %v765_v27 = vsel %vm764_vm4, %v508_v34, %v763_v7 }
 0x146   :  { %v564_v37 = vadd.f32 %v563_v29, %v2141_v10  ;;  %v667_v52 = vadd.f32 %v666_v50, %v665_v63  ;;  %v803_v62 = vsel %vm762_vm3, %v2373_v13, %v802_v58  ;;  %v674_v57 = vadd.f32 %v673_v8, %v672_v32  ;;  %v997_v13 = vld [vmem:[#allocation9 + $0x458] sm:$0xff] }
 0x147   :  { %v543_v39 = vadd.f32 %v2372_v45, %v2371_v56  ;;  %v688_v41 = vadd.f32 %v687_v12, %v686_v0  ;;  %v783_v31 = vsel %vm764_vm4, %v522_v49, %v782_v1  ;;  %v626_v28 = vrot.slane %v625_v35, 1  ;;  %v986_v12 = vld [vmem:[#allocation9 + $0x400] sm:$0xff] }
 0x148   :  { %v654_v11 = vrot.slane %v653_v43, 1  ;;  %v633_v46 = vrot.slane %v632_v33, 1  ;;  %v647_v22 = vrot.slane %v646_v20, 1  ;;  %v585_v14 = vadd.f32 %v584_v53, %v2145_v5 }
 0x149   :  { %v592_v59 = vadd.f32 %v591_v48, %v590_v25  ;;  %v606_v26 = vadd.f32 %v605_v19, %v604_v21  ;;  %v709_v23 = vadd.f32 %v708_v55, %v707_v2  ;;  %v804_v34 = vsel %vm764_vm4, %v543_v39, %v803_v62  ;;  %v990_v39 = vld [vmem:[#allocation9 + $0x420] sm:$0xff]  ;;  %v992_v55 = vld [vmem:[#allocation9 + $0x430] sm:$0xff] }
 0x14a   :  { %v791_v10 = vsel %vm766_vm5, %v571_v61, %v790_v15  ;;  %v767_v63 = vsel %vm766_vm5, %v550_v60, %v765_v27  ;;  %v784_v32 = vsel %vm766_vm5, %v564_v37, %v783_v31  ;;  %v668_v47 = vrot.slane %v667_v52, 1  ;;  %v996_v31 = vld [vmem:[#allocation9 + $0x450] sm:$0xff] }
 0x14b   :  { %v696_v0 = vrot.slane %v695_v44, 1  ;;  %v675_v3 = vrot.slane %v674_v57, 1  ;;  %v689_v18 = vrot.slane %v688_v41, 1  ;;  %v627_v16 = vadd.f32 %v626_v28, %v625_v35  ;;  %v988_v35 = vld [vmem:[#allocation9 + $0x410] sm:$0xff]  ;;  %v999_v28 = vld [vmem:[#allocation9 + $0x468] sm:$0xff] }
 0x14c   :  { %v655_v38 = vadd.f32 %v654_v11, %v653_v43  ;;  %v634_v9 = vadd.f32 %v633_v46, %v632_v33  ;;  %v648_v7 = vadd.f32 %v647_v22, %v646_v20  ;;  %v805_v5 = vsel %vm766_vm5, %v585_v14, %v804_v34  ;;  %v1001_v11 = vld [vmem:[#allocation9 + $0x478] sm:$0xff]  ;;  %v998_v22 = vld [vmem:[#allocation9 + $0x460] sm:$0xff]  ;;  %v1000_v14 = vld [vmem:[#allocation9 + $0x470] sm:$0xff] }
 0x14d   :  { %v792_v25 = vsel %vm768_vm6, %v613_v40, %v791_v10  ;;  %v769_v21 = vsel %vm768_vm6, %v592_v59, %v767_v63  ;;  %v785_v61 = vsel %vm768_vm6, %v606_v26, %v784_v32  ;;  %v710_v15 = vrot.slane %v709_v23, 1  ;;  %v1003_v59 = vld [vmem:[#allocation9 + $0x488] sm:$0xff]  ;;  %v1005_v26 = vld [vmem:[#allocation9 + $0x498] sm:$0xff]  ;;  %v1002_v10 = vld [vmem:[#allocation9 + $0x480] sm:$0xff] }
 0x14e   :  { %v683_v60 = vadd.f32 %v682_v51, %v2230_v42  ;;  %v779_v2 = vsel %vm770_vm7, %v2244_v4, %v2238_v30  ;;  %v669_v43 = vadd.f32 %v668_v47, %v667_v52  ;;  %v697_v24 = vadd.f32 %v696_v0, %v695_v44  ;;  %v991_v30 = vld [vmem:[#allocation9 + $0x428] sm:$0xff]  ;;  %v993_v4 = vld [vmem:[#allocation9 + $0x438] sm:$0xff]  ;;  %v1004_v63 = vld [vmem:[#allocation9 + $0x490] sm:$0xff] }
 0x14f   :  { %v676_v6 = vadd.f32 %v675_v3, %v674_v57  ;;  %v690_v49 = vadd.f32 %v689_v18, %v688_v41  ;;  %v806_v29 = vsel %vm768_vm6, %v627_v16, %v805_v5  ;;  %v793_v40 = vsel %vm770_vm7, %v655_v38, %v792_v25  ;;  %v995_v52 = vld [vmem:[#allocation9 + $0x448] sm:$0xff]  ;;  %v994_v41 = vld [vmem:[#allocation9 + $0x440] sm:$0xff]  ;;  %v1009_v47 = vld [vmem:[#allocation9 + $0x4b8] sm:$0xff] }
 0x150   :  { %v771_v50 = vsel %vm770_vm7, %v634_v9, %v769_v21  ;;  %v786_v8 = vsel %vm770_vm7, %v648_v7, %v785_v61  ;;  %v711_v54 = vadd.f32 %v710_v15, %v709_v23  ;;  %v780_v42 = vsel %vm772_vm8, %v683_v60, %v779_v2  ;;  %v1007_v32 = vld [vmem:[#allocation9 + $0x4a8] sm:$0xff]  ;;  %v1006_v18 = vld [vmem:[#allocation9 + $0x4a0] sm:$0xff]  ;;  %v1008_v16 = vld [vmem:[#allocation9 + $0x4b0] sm:$0xff] }
 0x151   :  { %v807_v51 = vsel %vm770_vm7, %v669_v43, %v806_v29  ;;  %v794_v58 = vsel %vm772_vm8, %v697_v24, %v793_v40  ;;  %v773_v33 = vsel %vm772_vm8, %v676_v6, %v771_v50  ;;  %v787_v20 = vsel %vm772_vm8, %v690_v49, %v786_v8  ;;  %v1011_v38 = vld [vmem:[#allocation9 + $0x4c8] sm:$0xff]  ;;  %v1013_v9 = vld [vmem:[#allocation9 + $0x4d8] sm:$0xff]  ;;  %v1010_v25 = vld [vmem:[#allocation9 + $0x4c0] sm:$0xff] }
 0x152   :  { %v1568_v36 = vpack.c.bf16 %v988_v35, %v986_v12  ;;  %v808_v56 = vsel %vm772_vm8, %v711_v54, %v807_v51  ;;  %v1570_v45 = vpack.c.bf16 %v993_v4, %v991_v30  ;;  %v1572_v62 = vpack.c.bf16 %v992_v55, %v990_v39  ;;  %v1012_v21 = vld [vmem:[#allocation9 + $0x4d0] sm:$0xff]  ;;  %v1015_v61 = vld [vmem:[#allocation9 + $0x4e8] sm:$0xff]  ;;  %v1017_v15 = vld [vmem:[#allocation9 + $0x4f8] sm:$0xff] }
 0x153   :  { %v1574_v57 = vpack.c.bf16 %v997_v13, %v995_v52  ;;  %v1576_v46 = vpack.c.bf16 %v996_v31, %v994_v41  ;;  %v1580_v23 = vpack.c.bf16 %v1000_v14, %v998_v22  ;;  %v1582_v34 = vpack.c.bf16 %v1005_v26, %v1003_v59  ;;  %v1014_v43 = vld [vmem:[#allocation9 + $0x4e0] sm:$0xff]  ;;  %v1016_v24 = vld [vmem:[#allocation9 + $0x4f0] sm:$0xff]  ;;  %v1019_v6 = vld [vmem:[#allocation9 + $0x508] sm:$0xff] }
 0x154   :  { %v1584_v0 = vpack.c.bf16 %v1004_v63, %v1002_v10  ;;  %v1586_v3 = vpack.c.bf16 %v1009_v47, %v1007_v32  ;;  %v1588_v7 = vpack.c.bf16 %v1008_v16, %v1006_v18  ;;  %v1590_v5 = vpack.c.bf16 %v1013_v9, %v1011_v38  ;;  %v1021_v49 = vld [vmem:[#allocation9 + $0x518] sm:$0xff]  ;;  %v1018_v50 = vld [vmem:[#allocation9 + $0x500] sm:$0xff]  ;;  %v1020_v8 = vld [vmem:[#allocation9 + $0x510] sm:$0xff] }
 0x155   :  { %v1592_v60 = vpack.c.bf16 %v1012_v21, %v1010_v25  ;;  %v1594_v2 = vpack.c.bf16 %v1017_v15, %v1015_v61  ;;  %v1596_v29 = vpack.c.bf16 %v1016_v24, %v1014_v43  ;;  %v1598_v40 = vpack.c.bf16 %v1021_v49, %v1019_v6  ;;  %v1023_v12 = vld [vmem:[#allocation9 + $0x528] sm:$0xff]  ;;  %v1025_v35 = vld [vmem:[#allocation9 + $0x538] sm:$0xff]  ;;  %v1022_v51 = vld [vmem:[#allocation9 + $0x520] sm:$0xff] }
 0x156   :  { %v1600_v54 = vpack.c.bf16 %v1020_v8, %v1018_v50  ;;  %v1024_v30 = vld [vmem:[#allocation9 + $0x530] sm:$0xff]  ;;  %v1027_v4 = vld [vmem:[#allocation9 + $0x548] sm:$0xff]  ;;  %v1037_v55 = vld [vmem:[#allocation9 + $0x598] sm:$0xff] }
 0x157   :  { %v1035_v39 = vld [vmem:[#allocation9 + $0x588] sm:$0xff]  ;;  %v1034_v13 = vld [vmem:[#allocation9 + $0x580] sm:$0xff]  ;;  %v1041_v41 = vld [vmem:[#allocation9 + $0x5b8] sm:$0xff] }
 0x158   :  { %v1614_v52 = vpack.c.bf16 %v1037_v55, %v1035_v39  ;;  %v1045_v22 = vld [vmem:[#allocation9 + $0x5d8] sm:$0xff]  ;;  %v1042_v26 = vld [vmem:[#allocation9 + $0x5c0] sm:$0xff]  ;;  %v1292_v16 = vld [vmem:[#allocation10 + $0x88] sm:$0xff] }
 0x159   :  { %v1049_v10 = vld [vmem:[#allocation9 + $0x5f8] sm:$0xff]  ;;  %v1046_v47 = vld [vmem:[#allocation9 + $0x5e0] sm:$0xff]  ;;  %v1277_v15 = vld [vmem:[#allocation10 + $0x10] sm:$0xff] }
 0x15a   :  { %v1291_v18 = vld [vmem:[#allocation10 + $0x80] sm:$0xff]  ;;  %v1294_v25 = vld [vmem:[#allocation10 + $0x98] sm:$0xff]  ;;  %v1296_v43 = vld [vmem:[#allocation10 + $0xa8] sm:$0xff] }
 0x15b   :  { %v1275_v38 = vld [vmem:[#allocation10] sm:$0xff]  ;;  %v1630_v9 = vpack.c.bf16 %v1292_v16, %v1291_v18  ;;  %v1288_v55 = vld [vmem:[#allocation10 + $0x68] sm:$0xff] }
 0x15c   :  { %v1279_v49 = vld [vmem:[#allocation10 + $0x20] sm:$0xff] }
 0x15d   :  { %1631 = vmatprep.subr.bf16.mxu1 %v1630_v9  ;;  %v1287_v39 = vld [vmem:[#allocation10 + $0x60] sm:$0xff] }
 0x171   :  { %v850_v44 = vpop.permute.xlu0 %849 }
 0x172   :  { %v853_v1 = vmul.f32 %v850_v44, %v780_v42  ;;  %v855_v53 = vmul.f32 %v850_v44, %v794_v58  ;;  %v852_v48 = vmul.f32 %v850_v44, %v773_v33  ;;  %v854_v19 = vmul.f32 %v850_v44, %v787_v20  ;;  %v1026_v20 = vld [vmem:[#allocation9 + $0x540] sm:$0xff] }
 0x173   :  { %v2311_v27 = vmul.f32 %v850_v44, %v2201_v17  ;;  %v857_v37 = vmul.f32 %v850_v44, %v808_v56  ;;  %v1578_v17 = vpack.c.bf16 %v1001_v11, %v999_v28  ;;  %v1602_v42 = vpack.c.bf16 %v1025_v35, %v1023_v12  ;;  %v1029_v44 = vld [vmem:[#allocation9 + $0x558] sm:$0xff]  ;;  %v1030_v56 = vld [vmem:[#allocation9 + $0x560] sm:$0xff]  ;;  %v1281_v12 = vld [vmem:[#allocation10 + $0x30] sm:$0xff] }
 0x174   :  { %1126 = vmatprep.mubr.f32.mxu1 %v853_v1  ;;  %1197 = vmatprep.mubr.f32.mxu0 %v855_v53  ;;  %v1604_v58 = vpack.c.bf16 %v1024_v30, %v1022_v51  ;;  %v1606_v33 = vpack.c.bf16 %v1029_v44, %v1027_v4  ;;  %v1031_v1 = vld [vmem:[#allocation9 + $0x568] sm:$0xff]  ;;  %v1033_v53 = vld [vmem:[#allocation9 + $0x578] sm:$0xff]  ;;  %v1038_v11 = vld [vmem:[#allocation9 + $0x5a0] sm:$0xff] }
 0x175   :  { %1127 = vmatmul.mubr.f32.vlgmr.msra.gmra.mrb[0].mxu1 %v852_v48  ;;  %1198 = vmatmul.mubr.f32.vlgmr.msra.gmra.mrb[0].mxu0 %v854_v19  ;;  %v1610_v19 = vpack.c.bf16 %v1033_v53, %v1031_v1  ;;  %v1282_v35 = vld [vmem:[#allocation10 + $0x38] sm:$0xff]  ;;  %v1283_v4 = vld [vmem:[#allocation10 + $0x40] sm:$0xff]  ;;  %v1284_v44 = vld [vmem:[#allocation10 + $0x48] sm:$0xff] }
 0x176   :  { %1569 = vmatpush1.bf16.msra.mxu0 %v1568_v36  ;;  %1268 = vmatprep.mubr.f32.mxu0 %v857_v37  ;;  %v1028_v36 = vld [vmem:[#allocation9 + $0x550] sm:$0xff]  ;;  %v1644_v51 = vpack.c.bf16 %v1282_v35, %v1281_v12  ;;  %v1286_v53 = vld [vmem:[#allocation10 + $0x58] sm:$0xff] }
 0x177   :  { %1571 = vmatprep.subr.bf16.mxu0 %v1570_v45  ;;  %v1608_v48 = vpack.c.bf16 %v1028_v36, %v1026_v20  ;;  %v1032_v45 = vld [vmem:[#allocation9 + $0x570] sm:$0xff]  ;;  %v1648_v20 = vpack.c.bf16 %v1284_v44, %v1283_v4 }
 0x178   :  { %v1612_v37 = vpack.c.bf16 %v1032_v45, %v1030_v56  ;;  %v1285_v1 = vld [vmem:[#allocation10 + $0x50] sm:$0xff] }
 0x179   :  { %v1652_v56 = vpack.c.bf16 %v1286_v53, %v1285_v1 }
 0x17a   :  { %1573 = vmatpush1.bf16.msra.mxu0 %v1572_v62  ;;  %v1036_v62 = vld [vmem:[#allocation9 + $0x590] sm:$0xff] }
 0x17b   :  { %1575 = vmatprep.subr.bf16.mxu0 %v1574_v57  ;;  %v1039_v57 = vld [vmem:[#allocation9 + $0x5a8] sm:$0xff]  ;;  %v1616_v31 = vpack.c.bf16 %v1036_v62, %v1034_v13  ;;  %v1306_v13 = vld [vmem:[#allocation10 + $0xf8] sm:$0xff] }
 0x17c   :  { %v1618_v28 = vpack.c.bf16 %v1041_v41, %v1039_v57  ;;  %v1289_v57 = vld [vmem:[#allocation10 + $0x70] sm:$0xff]  ;;  %v1290_v41 = vld [vmem:[#allocation10 + $0x78] sm:$0xff] }
 0x17e   :  { %1577 = vmatpush1.bf16.msra.mxu0 %v1576_v46  ;;  %v1040_v46 = vld [vmem:[#allocation9 + $0x5b0] sm:$0xff] }
 0x17f   :  { %1579 = vmatprep.subr.bf16.mxu0 %v1578_v17  ;;  %v1043_v17 = vld [vmem:[#allocation9 + $0x5c8] sm:$0xff]  ;;  %v1620_v14 = vpack.c.bf16 %v1040_v46, %v1038_v11  ;;  %v1050_v46 = vld [vmem:[%s2339_s3] sm:$0x3]  ;;  %s1814_s3 = smov [#allocation12]  }
 0x180   :  { %v1622_v59 = vpack.c.bf16 %v1045_v22, %v1043_v17  ;;  %v2374_v17 = vld [vmem:[#allocation17_spill] sm:$0xff]  ;;  %s1391_s27 = sshll.u32 %s1814_s3, 4  ;;  %s1392_s27 = int_to_ptr.vmem [resolvable:$true] %s1391_s27 }
 0x181   :  { %v2375_v22 = vsub.s32 0, %v2374_v17  ;;  %s1772_s28 = scalar_lea.vmem %s1392_s27, 128  ;;  %p1777_p5 = scmp.lt.s32.totalorder %s1392_s27, %s1392_s27 }
 0x182   :  { %1581 = vmatpush1.bf16.msra.mxu0 %v1580_v23  ;;  %v1044_v23 = vld [vmem:[#allocation9 + $0x5d0] sm:$0xff]  ;;  %p1773_p4 = scmp.ne.s32.totalorder %s1392_s27, %s1772_s28  ;;  %p1778_p6 = scmp.lt.s32.totalorder %s1772_s28, %s1772_s28 }
 0x183   :  { %1583 = vmatprep.subr.bf16.mxu0 %v1582_v34  ;;  %v1047_v34 = vld [vmem:[#allocation9 + $0x5e8] sm:$0xff]  ;;  %v1624_v63 = vpack.c.bf16 %v1044_v23, %v1042_v26 }
 0x184   :  { %v1626_v32 = vpack.c.bf16 %v1049_v10, %v1047_v34  ;;  %p1779_p7 = por %p1778_p6, %p1777_p5 }
 0x186   :  { %1585 = vmatpush1.bf16.msra.mxu0 %v1584_v0  ;;  %v1048_v0 = vld [vmem:[#allocation9 + $0x5f0] sm:$0xff]  ;;  %p1780_p8 = pnand %p1779_p7, %p1773_p4 }
 0x187   :  { %1587 = vmatprep.subr.bf16.mxu0 %v1586_v3  ;;  %v1628_v3 = vpack.c.bf16 %v1048_v0, %v1046_v47 }
 0x18a   :  { %1589 = vmatpush1.bf16.msra.mxu0 %v1588_v7  ;;  %v1276_v7 = vld [vmem:[#allocation10 + $0x8] sm:$0xff] }
 0x18b   :  { %1591 = vmatprep.subr.bf16.mxu0 %v1590_v5  ;;  %v1293_v5 = vld [vmem:[#allocation10 + $0x90] sm:$0xff]  ;;  %v1632_v21 = vpack.c.bf16 %v1276_v7, %v1275_v38 }
 0x18c   :  { %v1634_v61 = vpack.c.bf16 %v1294_v25, %v1293_v5 }
 0x18d   :  { %1633 = vmatpush3.bf16.msra.mxu1 %v1632_v21 }
 0x18e   :  { %1593 = vmatpush1.bf16.msra.mxu0 %v1592_v60  ;;  %v1278_v60 = vld [vmem:[#allocation10 + $0x18] sm:$0xff]  ;;  %1635 = vmatprep.subr.bf16.mxu1 %v1634_v61 }
 0x18f   :  { %1595 = vmatprep.subr.bf16.mxu0 %v1594_v2  ;;  %v1295_v2 = vld [vmem:[#allocation10 + $0xa0] sm:$0xff]  ;;  %v1636_v24 = vpack.c.bf16 %v1278_v60, %v1277_v15 }
 0x190   :  { %v1638_v6 = vpack.c.bf16 %v1296_v43, %v1295_v2 }
 0x191   :  { %1637 = vmatpush3.bf16.msra.mxu1 %v1636_v24 }
 0x192   :  { %1597 = vmatpush1.bf16.msra.mxu0 %v1596_v29  ;;  %v1297_v29 = vld [vmem:[#allocation10 + $0xb0] sm:$0xff]  ;;  %1639 = vmatprep.subr.bf16.mxu1 %v1638_v6 }
 0x193   :  { %1599 = vmatprep.subr.bf16.mxu0 %v1598_v40  ;;  %v1298_v40 = vld [vmem:[#allocation10 + $0xb8] sm:$0xff] }
 0x194   :  { %v1642_v8 = vpack.c.bf16 %v1298_v40, %v1297_v29 }
 0x196   :  { %1601 = vmatpush1.bf16.msra.mxu0 %v1600_v54  ;;  %v1299_v54 = vld [vmem:[#allocation10 + $0xc0] sm:$0xff] }
 0x197   :  { %1603 = vmatprep.subr.bf16.mxu0 %v1602_v42  ;;  %v1300_v42 = vld [vmem:[#allocation10 + $0xc8] sm:$0xff] }
 0x198   :  { %v1646_v30 = vpack.c.bf16 %v1300_v42, %v1299_v54 }
 0x19a   :  { %1605 = vmatpush1.bf16.msra.mxu0 %v1604_v58  ;;  %v1301_v58 = vld [vmem:[#allocation10 + $0xd0] sm:$0xff] }
 0x19b   :  { %1607 = vmatprep.subr.bf16.mxu0 %v1606_v33  ;;  %v1302_v33 = vld [vmem:[#allocation10 + $0xd8] sm:$0xff] }
 0x19c   :  { %v1650_v36 = vpack.c.bf16 %v1302_v33, %v1301_v58 }
 0x19e   :  { %1609 = vmatpush1.bf16.msra.mxu0 %v1608_v48  ;;  %v1303_v48 = vld [vmem:[#allocation10 + $0xe0] sm:$0xff] }
 0x19f   :  { %1611 = vmatprep.subr.bf16.mxu0 %v1610_v19  ;;  %v1304_v19 = vld [vmem:[#allocation10 + $0xe8] sm:$0xff] }
 0x1a0   :  { %v1654_v45 = vpack.c.bf16 %v1304_v19, %v1303_v48 }
 0x1a2   :  { %1613 = vmatpush1.bf16.msra.mxu0 %v1612_v37  ;;  %v1656_v37 = vpack.c.bf16 %v1288_v55, %v1287_v39 }
 0x1a3   :  { %1615 = vmatprep.subr.bf16.mxu0 %v1614_v52  ;;  %v1305_v52 = vld [vmem:[#allocation10 + $0xf0] sm:$0xff] }
 0x1a4   :  { %v1658_v62 = vpack.c.bf16 %v1306_v13, %v1305_v52 }
 0x1a6   :  { %1617 = vmatpush1.bf16.msra.mxu0 %v1616_v31  ;;  %v1660_v31 = vpack.c.bf16 %v1290_v41, %v1289_v57 }
 0x1a7   :  { %1619 = vmatprep.subr.bf16.mxu0 %v1618_v28 }
 0x1aa   :  { %1621 = vmatpush1.bf16.msra.mxu0 %v1620_v14  ;;  %v1055_v14 = vrot.slane %v1050_v46, %v2375_v22 }
 0x1ab   :  { %1623 = vmatprep.subr.bf16.mxu0 %v1622_v59  ;;  %v2376_v59 = vsub.s32 1, %v2374_v17 }
 0x1ad   :  { %v1059_v26 = vrot.slane %v1050_v46, %v2376_v59 }
 0x1ae   :  { %1625 = vmatpush1.bf16.msra.mxu0 %v1624_v63 }
 0x1af   :  { %1627 = vmatprep.subr.bf16.mxu0 %v1626_v32 }
 0x1b2   :  { %1629 = vmatpush1.bf16.msra.mxu0 %v1628_v3  ;;  %v1402_v3 = vld [vmem:[%s2341_s5] ss:$0 sm:$0xff] }
 0x1b5   :  { %1269 = vmatmul.mubr.f32.vlgmr.msra.gmra.mrb[0].mxu0 %v2311_v27  ;;  %v1280_v27 = vld [vmem:[#allocation10 + $0x28] sm:$0xff] }
 0x1b6   :  { %v1640_v50 = vpack.c.bf16 %v1280_v27, %v1279_v49 }
 0x1b8   :  { %1641 = vmatpush3.bf16.msra.mxu1 %v1640_v50 }
 0x1b9   :  { %1643 = vmatprep.subr.bf16.mxu1 %v1642_v8 }
 0x1bc   :  { %1645 = vmatpush3.bf16.msra.mxu1 %v1644_v51 }
 0x1bd   :  { %1647 = vmatprep.subr.bf16.mxu1 %v1646_v30 }
 0x1c0   :  { %1649 = vmatpush3.bf16.msra.mxu1 %v1648_v20 }
 0x1c1   :  { %1651 = vmatprep.subr.bf16.mxu1 %v1650_v36 }
 0x1c4   :  { %1653 = vmatpush3.bf16.msra.mxu1 %v1652_v56 }
 0x1c5   :  { %1655 = vmatprep.subr.bf16.mxu1 %v1654_v45 }
 0x1c8   :  { %1657 = vmatpush3.bf16.msra.mxu1 %v1656_v37 }
 0x1c9   :  { %1659 = vmatprep.subr.bf16.mxu1 %v1658_v62 }
 0x1cc   :  { %1661 = vmatpush3.bf16.msra.mxu1 %v1660_v31 }
 0x248   :  { %v1128_v28 = vpop.f32.mrb[0].mxu1 }
 0x249   :  { %v1130_v11 = vpop.f32.mrb[1].mxu1  ;;  %v1129_v23 = vadd.f32 %v1128_v28, %v1055_v14 }
 0x24a   :  { %v1131_v34 = vadd.f32 %v1130_v11, %v1059_v26 }
 0x288   :  { %v1270_v10 = vpop.f32.mrb[0].mxu0 }
 0x289   :  { %v1663_v63 = vadd.f32 %v1270_v10, %v1129_v23  ;;  %v1272_v32 = vpop.f32.mrb[1].mxu0 }
 0x28a   :  { %v1665_v47 = vadd.f32 %v1272_v32, %v1131_v34 }
 0x28c   :  { %1378 = vmatprep.mubr.f32.mxu1 %v1665_v47 }
 0x28d   :  { %1379 = vmatmul.mubr.f32.vlgmr.msra.gmra.mrb[2].mxu1 %v1663_v63 }
 0x360   :  { %v1435_v0 = vpop.f32.mrb[2].mxu1 }
 0x361   :  { %v1436_v18 = vpop.f32.mrb[3].mxu1 }
 0x362   :  { %v1437_v16 = vadd.f32 %v1436_v18, %v1435_v0 }
 0x364   :  { %v1381_v38 = vadd.f32 %v1437_v16, %v1402_v3 }
 0x366   :  { %1384 = vst [vmem:[#allocation12] sm:$0xff] %v1381_v38 }
 0x367   :  { %1783 = shalt.err (!%p1780_p8)
}
 0x368   :  { %s1784_s7 = scalar_lea.hbm %s2342_s6, 128 }
 0x369   :  { %p1785_p9 = scmp.ne.s32.totalorder %s2342_s6, %s1784_s7  ;;  %p1788_p10 = scmp.lt.u32.totalorder %s1784_s7, %s2342_s6 }
 0x36b   :  { %p1790_p11 = pnand %p1788_p10, %p1785_p9 }
 0x36d   :  { %1793 = shalt.err (!%p1790_p11)
}
 0x36e   :  { %1394 = dma.vmem_to_hbm [thread:$0]  %s1392_s27, 128, %s2342_s6, [#allocation6]  }
 0x36f   :  { %1800 = dma.done.wait [#allocation6], 128  }
 0x370   :  { %1801 = vsyncadd [#allocation6], 4294967168 }
 0x371   :  { %1398 = vsyncpa [#allocation5], 1 }
 0x372   :  { %1399 = vsyncpa [#allocation8], 1 }
 0x373   :  { %1400 = vsyncpa [#allocation11], 1 }
 0x374   :  { %1401 = vsyncpa [#allocation6], 1 }

</bundles_post_ra>
